<compile_context>
chip_gen: v7x
topology: tpu7x:2x2x1
jax: 0.10.0
libtpu: 0.0.40
codegen_flags: <defaults>
</compile_context>

<pallas_src>
import jax
import jax.numpy as jnp
from jax.experimental import pallas as pl
from jax.experimental.pallas import tpu as pltpu


def fgru_kernel(x_ref, wi_ref, bi_ref, wh_ref, out_ref, p_ref):
    """Whole FGRU forward in VMEM.

    x_ref:   [T, B, E]    bf16  inputs, x_ref[t, b] = txt[b, t]
    wi_ref:  [E, 3E]      bf16  fused i2h weights, columns [up | reset | cand]
    bi_ref:  [2, 3E]      f32   packed biases:
                                row 0 (step 0 only):    [ . | . | b_i2h ]
                                row 1 (recurrent rows): [b_i2h_up + b_h2h_up |
                                  b_i2h_reset + b_h2h_reset | b_i2h + b_h2h]
    wh_ref:  [E, 3E]      bf16  fused h2h weights, columns [up | reset | cand]
    out_ref: [B, E]       f32   mean over the 1 + (T-1)*B concatenated states
    p_ref:   [T, B*B, 3E] f32   VMEM scratch: input projections broadcast to
                                the cross-product rows (p_ref[t, a*B+b] =
                                projection of txt[b, t]); written once pre-loop
    """
    T, B, E = x_ref.shape
    BB = B * B

    # ---- one fused i2h projection for all steps (pre-loop, off the chain) ----
    x = x_ref[...].reshape(T * B, E)                                    # bf16
    raw = jnp.dot(x, wi_ref[...], preferred_element_type=jnp.float32)  # [T*B,3E]

    # Step 0: h0 = tanh(i2h(txt[:, 0])) with only the i2h bias (row 0 of bi).
    h0 = jnp.tanh(raw[0:B, 2 * E:] + bi_ref[0:1, 2 * E:])              # [B, E]

    # Recurrent-step projections with fully packed biases (incl. b_h2h),
    # broadcast once to the [a, b] cross-product rows: p_ref[t, a*B+b] = p2[t, b].
    # Pure layout plumbing, pre-loop; the t=0 rows are never read by the loop.
    p2 = (raw + bi_ref[1:2, :]).reshape(T, B, 3 * E)                    # [T, B, 3E]
    for a in range(B):
        p_ref[:, a * B:(a + 1) * B, :] = p2

    # Cross-product initial state: H[a*B + b] = h0[a].
    H0 = jnp.broadcast_to(h0[:, None, :], (B, B, E)).reshape(BB, E)

    wh = wh_ref[...]                                                    # [E, 3E] bf16
    wur = wh[:, :2 * E]                                                 # [E, 2E]
    wc = wh[:, 2 * E:]                                                  # [E, E]

    # ---- recurrence: 2 dependent MXU pushes / step, f32 VPU + single-EUP gates ----
    def body(i, carry):
        H, acc = carry
        pi = p_ref[i]                                                   # [BB, 3E] f32
        ur = jnp.dot(H.astype(jnp.bfloat16), wur,
                     preferred_element_type=jnp.float32) + pi[:, :2 * E]
        gates = 0.5 * jnp.tanh(0.5 * ur) + 0.5                          # sigmoid, one EUP op
        update = gates[:, :E]
        reset = gates[:, E:]
        cand = jnp.tanh(
            jnp.dot((reset * H).astype(jnp.bfloat16), wc,
                    preferred_element_type=jnp.float32) + pi[:, 2 * E:])
        H = H + update * (cand - H)                                     # FMA-form blend
        return H, acc + H                                               # deferred b-reduce

    _, acc = jax.lax.fori_loop(
        1, T, body, (H0, jnp.zeros((BB, E), jnp.float32)), unroll=True)

    # ---- deferred cross-sublane reduction + mean ----
    total = h0 + acc.reshape(B, B, E).sum(axis=1)                       # [B, E]
    out_ref[...] = total * (1.0 / (1.0 + (T - 1) * B))


@jax.jit
def fgru_pallas(txt, W, b):
    """txt: [B, T, E] f32.  W: [6, E, E] pre-transposed (kernel does x @ W[k]).
    b: [6, E].  Order: 0 i2h_up, 1 h2h_up, 2 i2h_reset, 3 h2h_reset, 4 i2h, 5 h2h.
    """
    B, T, E = txt.shape

    # Host-side packing: weight concats/casts + bias pair-sums only (no B-fold
    # duplication of the inputs).
    w_i2h = jnp.concatenate([W[0], W[2], W[4]], axis=1).astype(jnp.bfloat16)
    w_h2h = jnp.concatenate([W[1], W[3], W[5]], axis=1).astype(jnp.bfloat16)
    bias = jnp.stack([
        jnp.concatenate([b[0] + b[1], b[2] + b[3], b[4]]),              # step-0 row
        jnp.concatenate([b[0] + b[1], b[2] + b[3], b[4] + b[5]]),       # recurrent rows
    ])                                                                  # [2, 3E] f32
    x = jnp.transpose(txt, (1, 0, 2)).astype(jnp.bfloat16)              # [T, B, E]

    vmem = pl.BlockSpec(memory_space=pltpu.MemorySpace.VMEM)
    return pl.pallas_call(
        fgru_kernel,
        out_shape=jax.ShapeDtypeStruct((B, E), jnp.float32),
        in_specs=[vmem] * 4,
        out_specs=vmem,
        scratch_shapes=[pltpu.VMEM((T, B * B, 3 * E), jnp.float32)],
    )(x, w_i2h, bias, w_h2h)


def fgru_reference(txt, W, b):
    """Pure-JAX f32 replica of the PyTorch forward (incl. broadcasting quirk)."""
    B, T, E = txt.shape
    res = []
    for i in range(T):
        x = txt[:, i]                                                   # [B, E]
        if i == 0:
            out = jnp.tanh(x @ W[4] + b[4])[:, None, :]
        else:
            prev = res[i - 1]
            update = jax.nn.sigmoid((x @ W[0] + b[0]) + (prev @ W[1] + b[1]))
            reset = jax.nn.sigmoid((x @ W[2] + b[2]) + (prev @ W[3] + b[3]))
            cand = jnp.tanh((x @ W[4] + b[4]) + ((reset * prev) @ W[5] + b[5]))
            out = update * cand + (1.0 - update) * prev
        res.append(out)
    return jnp.concatenate(res, axis=1).mean(axis=1)


def fgru_reference_bf16(txt, W, b):
    """Same math as the kernel: bf16 MXU operands, f32 elementwise, tanh-form
    sigmoid, packed biases, FMA-form gate blend."""
    bf, f32 = jnp.bfloat16, jnp.float32
    B, T, E = txt.shape

    def mm(x, w):
        return jnp.dot(x.astype(bf), w.astype(bf), preferred_element_type=f32)

    def sig(x):
        return 0.5 * jnp.tanh(0.5 * x) + 0.5

    res = []
    for i in range(T):
        x = txt[:, i]
        if i == 0:
            out = jnp.tanh(mm(x, W[4]) + b[4])[:, None, :]
        else:
            prev = res[i - 1]
            update = sig(mm(x, W[0]) + (b[0] + b[1]) + mm(prev, W[1]))
            reset = sig(mm(x, W[2]) + (b[2] + b[3]) + mm(prev, W[3]))
            cand = jnp.tanh(mm(x, W[4]) + (b[4] + b[5]) + mm(reset * prev, W[5]))
            out = prev + update * (cand - prev)
        res.append(out)
    return jnp.concatenate(res, axis=1).mean(axis=1)


if __name__ == "__main__":
    B, T, E = 4, 8, 128   # batch, num_steps, emb_dim

    key = jax.random.PRNGKey(0)
    k_txt, k_w, k_b = jax.random.split(key, 3)

    txt = jax.random.normal(k_txt, (B, T, E), dtype=jnp.float32)

    # PyTorch nn.Linear default init: U(-1/sqrt(in), 1/sqrt(in)); weights
    # stored pre-transposed so the kernel computes x @ W[k] + b[k].
    bound = 1.0 / jnp.sqrt(jnp.float32(E))
    W = jax.random.uniform(k_w, (6, E, E), minval=-bound, maxval=bound,
                           dtype=jnp.float32)
    b = jax.random.uniform(k_b, (6, E), minval=-bound, maxval=bound,
                           dtype=jnp.float32)

    out = jax.block_until_ready(fgru_pallas(txt, W, b))
    assert out.shape == (B, E)

    # Exact-math check: reference replicating the kernel's bf16 MXU operands
    # and gate formulations.
    ref_bf16 = fgru_reference_bf16(txt, W, b)
    assert jnp.allclose(out, ref_bf16, atol=1e-3, rtol=1e-3), (
        float(jnp.max(jnp.abs(out - ref_bf16))))

    # Precision check vs. the full-f32 PyTorch-equivalent forward (bf16 MXU
    # operands through T recurrent steps => ~1e-2-scale differences expected).
    ref_f32 = fgru_reference(txt, W, b)
    assert jnp.allclose(out, ref_f32, atol=5e-2, rtol=5e-2), (
        float(jnp.max(jnp.abs(out - ref_f32))))

    print("KERNEL_OK")
</pallas_src>

<mosaic_0001>
module attributes {stable_mosaic.version = 11 : i64} {
  func.func @fgru_kernel(%arg0: memref<8x4x128xbf16, #tpu.memory_space<vmem>>, %arg1: memref<128x384xbf16, #tpu.memory_space<vmem>>, %arg2: memref<2x384xf32, #tpu.memory_space<vmem>>, %arg3: memref<128x384xbf16, #tpu.memory_space<vmem>>, %arg4: memref<4x128xf32, #tpu.memory_space<vmem>>, %arg5: memref<8x16x384xf32, #tpu.memory_space<vmem>>) attributes {dimension_semantics = [], scalar_prefetch = 0 : i64, scratch_operands = 1 : i64, tpu.core_type = #tpu.core_type<tc>} {
    %c0 = arith.constant 0 : index
    %c0_0 = arith.constant 0 : index
    %c0_1 = arith.constant 0 : index
    %0 = vector.load %arg0[%c0, %c0_0, %c0_1] : memref<8x4x128xbf16, #tpu.memory_space<vmem>>, vector<8x4x128xbf16>
    %1 = vector.shape_cast %0 : vector<8x4x128xbf16> to vector<32x128xbf16>
    %c0_2 = arith.constant 0 : index
    %c0_3 = arith.constant 0 : index
    %2 = vector.load %arg1[%c0_2, %c0_3] : memref<128x384xbf16, #tpu.memory_space<vmem>>, vector<128x384xbf16>
    %cst = arith.constant dense<0.000000e+00> : vector<32x384xf32>
    %3 = tpu.matmul %1, %2, %cst {dimension_numbers = #tpu.dot_dimension_numbers<[1], [0], [0], [1], [0, 0, 1, 1], [], []>} : vector<32x128xbf16>, vector<128x384xbf16>, vector<32x384xf32> -> vector<32x384xf32>
    %4 = vector.extract_strided_slice %3 {offsets = [0, 256], sizes = [4, 128], strides = [1, 1]} : vector<32x384xf32> to vector<4x128xf32>
    %c0_4 = arith.constant 0 : index
    %c256 = arith.constant 256 : index
    %5 = vector.load %arg2[%c0_4, %c256] : memref<2x384xf32, #tpu.memory_space<vmem>>, vector<1x128xf32>
    %6 = vector.broadcast %5 : vector<1x128xf32> to vector<4x128xf32>
    %7 = arith.addf %4, %6 : vector<4x128xf32>
    %8 = math.tanh %7 : vector<4x128xf32>
    %c1 = arith.constant 1 : index
    %c0_5 = arith.constant 0 : index
    %9 = vector.load %arg2[%c1, %c0_5] : memref<2x384xf32, #tpu.memory_space<vmem>>, vector<1x384xf32>
    %10 = vector.broadcast %9 : vector<1x384xf32> to vector<32x384xf32>
    %11 = arith.addf %3, %10 : vector<32x384xf32>
    %12 = vector.shape_cast %11 : vector<32x384xf32> to vector<8x4x384xf32>
    %c0_6 = arith.constant 0 : index
    %c0_7 = arith.constant 0 : index
    %c0_8 = arith.constant 0 : index
    %13 = vector.load %arg5[%c0_6, %c0_7, %c0_8] : memref<8x16x384xf32, #tpu.memory_space<vmem>>, vector<8x4x384xf32>
    tpu.vector_store %arg5[%c0_6, %c0_7, %c0_8], %12 {strides = array<i32>} : memref<8x16x384xf32, #tpu.memory_space<vmem>>, vector<8x4x384xf32>,
    %c0_9 = arith.constant 0 : index
    %c4 = arith.constant 4 : index
    %c0_10 = arith.constant 0 : index
    %14 = vector.load %arg5[%c0_9, %c4, %c0_10] : memref<8x16x384xf32, #tpu.memory_space<vmem>>, vector<8x4x384xf32>
    tpu.vector_store %arg5[%c0_9, %c4, %c0_10], %12 {strides = array<i32>} : memref<8x16x384xf32, #tpu.memory_space<vmem>>, vector<8x4x384xf32>,
    %c0_11 = arith.constant 0 : index
    %c8 = arith.constant 8 : index
    %c0_12 = arith.constant 0 : index
    %15 = vector.load %arg5[%c0_11, %c8, %c0_12] : memref<8x16x384xf32, #tpu.memory_space<vmem>>, vector<8x4x384xf32>
    tpu.vector_store %arg5[%c0_11, %c8, %c0_12], %12 {strides = array<i32>} : memref<8x16x384xf32, #tpu.memory_space<vmem>>, vector<8x4x384xf32>,
    %c0_13 = arith.constant 0 : index
    %c12 = arith.constant 12 : index
    %c0_14 = arith.constant 0 : index
    %16 = vector.load %arg5[%c0_13, %c12, %c0_14] : memref<8x16x384xf32, #tpu.memory_space<vmem>>, vector<8x4x384xf32>
    tpu.vector_store %arg5[%c0_13, %c12, %c0_14], %12 {strides = array<i32>} : memref<8x16x384xf32, #tpu.memory_space<vmem>>, vector<8x4x384xf32>,
    %17 = vector.shape_cast %8 : vector<4x128xf32> to vector<4x1x128xf32>
    %18 = vector.shape_cast %17 : vector<4x1x128xf32> to vector<4x1x128xf32>
    %19 = vector.broadcast %18 : vector<4x1x128xf32> to vector<4x4x128xf32>
    %20 = vector.shape_cast %19 : vector<4x4x128xf32> to vector<16x128xf32>
    %c0_15 = arith.constant 0 : index
    %c0_16 = arith.constant 0 : index
    %21 = vector.load %arg3[%c0_15, %c0_16] : memref<128x384xbf16, #tpu.memory_space<vmem>>, vector<128x384xbf16>
    %22 = vector.extract_strided_slice %21 {offsets = [0, 0], sizes = [128, 256], strides = [1, 1]} : vector<128x384xbf16> to vector<128x256xbf16>
    %23 = vector.extract_strided_slice %21 {offsets = [0, 256], sizes = [128, 128], strides = [1, 1]} : vector<128x384xbf16> to vector<128x128xbf16>
    %cst_17 = arith.constant 0.000000e+00 : f32
    %24 = vector.broadcast %cst_17 : f32 to vector<16x128xf32>
    %c1_i32 = arith.constant 1 : i32
    %25 = arith.index_cast %c1_i32 : i32 to index
    %c0_18 = arith.constant 0 : index
    %c0_19 = arith.constant 0 : index
    %26 = vector.load %arg5[%25, %c0_18, %c0_19] : memref<8x16x384xf32, #tpu.memory_space<vmem>>, vector<1x16x384xf32>
    %27 = vector.shape_cast %26 : vector<1x16x384xf32> to vector<16x384xf32>
    %28 = arith.truncf %20 : vector<16x128xf32> to vector<16x128xbf16>
    %cst_20 = arith.constant dense<0.000000e+00> : vector<16x256xf32>
    %29 = tpu.matmul %28, %22, %cst_20 {dimension_numbers = #tpu.dot_dimension_numbers<[1], [0], [0], [1], [0, 0, 1, 1], [], []>} : vector<16x128xbf16>, vector<128x256xbf16>, vector<16x256xf32> -> vector<16x256xf32>
    %30 = vector.extract_strided_slice %27 {offsets = [0, 0], sizes = [16, 256], strides = [1, 1]} : vector<16x384xf32> to vector<16x256xf32>
    %31 = arith.addf %29, %30 : vector<16x256xf32>
    %cst_21 = arith.constant 5.000000e-01 : f32
    %32 = vector.broadcast %cst_21 : f32 to vector<16x256xf32>
    %33 = arith.mulf %32, %31 : vector<16x256xf32>
    %34 = math.tanh %33 : vector<16x256xf32>
    %cst_22 = arith.constant 5.000000e-01 : f32
    %35 = vector.broadcast %cst_22 : f32 to vector<16x256xf32>
    %36 = arith.mulf %35, %34 : vector<16x256xf32>
    %cst_23 = arith.constant 5.000000e-01 : f32
    %37 = vector.broadcast %cst_23 : f32 to vector<16x256xf32>
    %38 = arith.addf %36, %37 : vector<16x256xf32>
    %39 = vector.extract_strided_slice %38 {offsets = [0, 0], sizes = [16, 128], strides = [1, 1]} : vector<16x256xf32> to vector<16x128xf32>
    %40 = vector.extract_strided_slice %38 {offsets = [0, 128], sizes = [16, 128], strides = [1, 1]} : vector<16x256xf32> to vector<16x128xf32>
    %41 = arith.mulf %40, %20 : vector<16x128xf32>
    %42 = arith.truncf %41 : vector<16x128xf32> to vector<16x128xbf16>
    %cst_24 = arith.constant dense<0.000000e+00> : vector<16x128xf32>
    %43 = tpu.matmul %42, %23, %cst_24 {dimension_numbers = #tpu.dot_dimension_numbers<[1], [0], [0], [1], [0, 0, 1, 1], [], []>} : vector<16x128xbf16>, vector<128x128xbf16>, vector<16x128xf32> -> vector<16x128xf32>
    %44 = vector.extract_strided_slice %27 {offsets = [0, 256], sizes = [16, 128], strides = [1, 1]} : vector<16x384xf32> to vector<16x128xf32>
    %45 = arith.addf %43, %44 : vector<16x128xf32>
    %46 = math.tanh %45 : vector<16x128xf32>
    %47 = arith.subf %46, %20 : vector<16x128xf32>
    %48 = arith.mulf %39, %47 : vector<16x128xf32>
    %49 = arith.addf %20, %48 : vector<16x128xf32>
    %50 = arith.addf %24, %49 : vector<16x128xf32>
    %c2_i32 = arith.constant 2 : i32
    %51 = arith.index_cast %c2_i32 : i32 to index
    %c0_25 = arith.constant 0 : index
    %c0_26 = arith.constant 0 : index
    %52 = vector.load %arg5[%51, %c0_25, %c0_26] : memref<8x16x384xf32, #tpu.memory_space<vmem>>, vector<1x16x384xf32>
    %53 = vector.shape_cast %52 : vector<1x16x384xf32> to vector<16x384xf32>
    %54 = arith.truncf %49 : vector<16x128xf32> to vector<16x128xbf16>
    %cst_27 = arith.constant dense<0.000000e+00> : vector<16x256xf32>
    %55 = tpu.matmul %54, %22, %cst_27 {dimension_numbers = #tpu.dot_dimension_numbers<[1], [0], [0], [1], [0, 0, 1, 1], [], []>} : vector<16x128xbf16>, vector<128x256xbf16>, vector<16x256xf32> -> vector<16x256xf32>
    %56 = vector.extract_strided_slice %53 {offsets = [0, 0], sizes = [16, 256], strides = [1, 1]} : vector<16x384xf32> to vector<16x256xf32>
    %57 = arith.addf %55, %56 : vector<16x256xf32>
    %cst_28 = arith.constant 5.000000e-01 : f32
    %58 = vector.broadcast %cst_28 : f32 to vector<16x256xf32>
    %59 = arith.mulf %58, %57 : vector<16x256xf32>
    %60 = math.tanh %59 : vector<16x256xf32>
    %cst_29 = arith.constant 5.000000e-01 : f32
    %61 = vector.broadcast %cst_29 : f32 to vector<16x256xf32>
    %62 = arith.mulf %61, %60 : vector<16x256xf32>
    %cst_30 = arith.constant 5.000000e-01 : f32
    %63 = vector.broadcast %cst_30 : f32 to vector<16x256xf32>
    %64 = arith.addf %62, %63 : vector<16x256xf32>
    %65 = vector.extract_strided_slice %64 {offsets = [0, 0], sizes = [16, 128], strides = [1, 1]} : vector<16x256xf32> to vector<16x128xf32>
    %66 = vector.extract_strided_slice %64 {offsets = [0, 128], sizes = [16, 128], strides = [1, 1]} : vector<16x256xf32> to vector<16x128xf32>
    %67 = arith.mulf %66, %49 : vector<16x128xf32>
    %68 = arith.truncf %67 : vector<16x128xf32> to vector<16x128xbf16>
    %cst_31 = arith.constant dense<0.000000e+00> : vector<16x128xf32>
    %69 = tpu.matmul %68, %23, %cst_31 {dimension_numbers = #tpu.dot_dimension_numbers<[1], [0], [0], [1], [0, 0, 1, 1], [], []>} : vector<16x128xbf16>, vector<128x128xbf16>, vector<16x128xf32> -> vector<16x128xf32>
    %70 = vector.extract_strided_slice %53 {offsets = [0, 256], sizes = [16, 128], strides = [1, 1]} : vector<16x384xf32> to vector<16x128xf32>
    %71 = arith.addf %69, %70 : vector<16x128xf32>
    %72 = math.tanh %71 : vector<16x128xf32>
    %73 = arith.subf %72, %49 : vector<16x128xf32>
    %74 = arith.mulf %65, %73 : vector<16x128xf32>
    %75 = arith.addf %49, %74 : vector<16x128xf32>
    %76 = arith.addf %50, %75 : vector<16x128xf32>
    %c3_i32 = arith.constant 3 : i32
    %77 = arith.index_cast %c3_i32 : i32 to index
    %c0_32 = arith.constant 0 : index
    %c0_33 = arith.constant 0 : index
    %78 = vector.load %arg5[%77, %c0_32, %c0_33] : memref<8x16x384xf32, #tpu.memory_space<vmem>>, vector<1x16x384xf32>
    %79 = vector.shape_cast %78 : vector<1x16x384xf32> to vector<16x384xf32>
    %80 = arith.truncf %75 : vector<16x128xf32> to vector<16x128xbf16>
    %cst_34 = arith.constant dense<0.000000e+00> : vector<16x256xf32>
    %81 = tpu.matmul %80, %22, %cst_34 {dimension_numbers = #tpu.dot_dimension_numbers<[1], [0], [0], [1], [0, 0, 1, 1], [], []>} : vector<16x128xbf16>, vector<128x256xbf16>, vector<16x256xf32> -> vector<16x256xf32>
    %82 = vector.extract_strided_slice %79 {offsets = [0, 0], sizes = [16, 256], strides = [1, 1]} : vector<16x384xf32> to vector<16x256xf32>
    %83 = arith.addf %81, %82 : vector<16x256xf32>
    %cst_35 = arith.constant 5.000000e-01 : f32
    %84 = vector.broadcast %cst_35 : f32 to vector<16x256xf32>
    %85 = arith.mulf %84, %83 : vector<16x256xf32>
    %86 = math.tanh %85 : vector<16x256xf32>
    %cst_36 = arith.constant 5.000000e-01 : f32
    %87 = vector.broadcast %cst_36 : f32 to vector<16x256xf32>
    %88 = arith.mulf %87, %86 : vector<16x256xf32>
    %cst_37 = arith.constant 5.000000e-01 : f32
    %89 = vector.broadcast %cst_37 : f32 to vector<16x256xf32>
    %90 = arith.addf %88, %89 : vector<16x256xf32>
    %91 = vector.extract_strided_slice %90 {offsets = [0, 0], sizes = [16, 128], strides = [1, 1]} : vector<16x256xf32> to vector<16x128xf32>
    %92 = vector.extract_strided_slice %90 {offsets = [0, 128], sizes = [16, 128], strides = [1, 1]} : vector<16x256xf32> to vector<16x128xf32>
    %93 = arith.mulf %92, %75 : vector<16x128xf32>
    %94 = arith.truncf %93 : vector<16x128xf32> to vector<16x128xbf16>
    %cst_38 = arith.constant dense<0.000000e+00> : vector<16x128xf32>
    %95 = tpu.matmul %94, %23, %cst_38 {dimension_numbers = #tpu.dot_dimension_numbers<[1], [0], [0], [1], [0, 0, 1, 1], [], []>} : vector<16x128xbf16>, vector<128x128xbf16>, vector<16x128xf32> -> vector<16x128xf32>
    %96 = vector.extract_strided_slice %79 {offsets = [0, 256], sizes = [16, 128], strides = [1, 1]} : vector<16x384xf32> to vector<16x128xf32>
    %97 = arith.addf %95, %96 : vector<16x128xf32>
    %98 = math.tanh %97 : vector<16x128xf32>
    %99 = arith.subf %98, %75 : vector<16x128xf32>
    %100 = arith.mulf %91, %99 : vector<16x128xf32>
    %101 = arith.addf %75, %100 : vector<16x128xf32>
    %102 = arith.addf %76, %101 : vector<16x128xf32>
    %c4_i32 = arith.constant 4 : i32
    %103 = arith.index_cast %c4_i32 : i32 to index
    %c0_39 = arith.constant 0 : index
    %c0_40 = arith.constant 0 : index
    %104 = vector.load %arg5[%103, %c0_39, %c0_40] : memref<8x16x384xf32, #tpu.memory_space<vmem>>, vector<1x16x384xf32>
    %105 = vector.shape_cast %104 : vector<1x16x384xf32> to vector<16x384xf32>
    %106 = arith.truncf %101 : vector<16x128xf32> to vector<16x128xbf16>
    %cst_41 = arith.constant dense<0.000000e+00> : vector<16x256xf32>
    %107 = tpu.matmul %106, %22, %cst_41 {dimension_numbers = #tpu.dot_dimension_numbers<[1], [0], [0], [1], [0, 0, 1, 1], [], []>} : vector<16x128xbf16>, vector<128x256xbf16>, vector<16x256xf32> -> vector<16x256xf32>
    %108 = vector.extract_strided_slice %105 {offsets = [0, 0], sizes = [16, 256], strides = [1, 1]} : vector<16x384xf32> to vector<16x256xf32>
    %109 = arith.addf %107, %108 : vector<16x256xf32>
    %cst_42 = arith.constant 5.000000e-01 : f32
    %110 = vector.broadcast %cst_42 : f32 to vector<16x256xf32>
    %111 = arith.mulf %110, %109 : vector<16x256xf32>
    %112 = math.tanh %111 : vector<16x256xf32>
    %cst_43 = arith.constant 5.000000e-01 : f32
    %113 = vector.broadcast %cst_43 : f32 to vector<16x256xf32>
    %114 = arith.mulf %113, %112 : vector<16x256xf32>
    %cst_44 = arith.constant 5.000000e-01 : f32
    %115 = vector.broadcast %cst_44 : f32 to vector<16x256xf32>
    %116 = arith.addf %114, %115 : vector<16x256xf32>
    %117 = vector.extract_strided_slice %116 {offsets = [0, 0], sizes = [16, 128], strides = [1, 1]} : vector<16x256xf32> to vector<16x128xf32>
    %118 = vector.extract_strided_slice %116 {offsets = [0, 128], sizes = [16, 128], strides = [1, 1]} : vector<16x256xf32> to vector<16x128xf32>
    %119 = arith.mulf %118, %101 : vector<16x128xf32>
    %120 = arith.truncf %119 : vector<16x128xf32> to vector<16x128xbf16>
    %cst_45 = arith.constant dense<0.000000e+00> : vector<16x128xf32>
    %121 = tpu.matmul %120, %23, %cst_45 {dimension_numbers = #tpu.dot_dimension_numbers<[1], [0], [0], [1], [0, 0, 1, 1], [], []>} : vector<16x128xbf16>, vector<128x128xbf16>, vector<16x128xf32> -> vector<16x128xf32>
    %122 = vector.extract_strided_slice %105 {offsets = [0, 256], sizes = [16, 128], strides = [1, 1]} : vector<16x384xf32> to vector<16x128xf32>
    %123 = arith.addf %121, %122 : vector<16x128xf32>
    %124 = math.tanh %123 : vector<16x128xf32>
    %125 = arith.subf %124, %101 : vector<16x128xf32>
    %126 = arith.mulf %117, %125 : vector<16x128xf32>
    %127 = arith.addf %101, %126 : vector<16x128xf32>
    %128 = arith.addf %102, %127 : vector<16x128xf32>
    %c5_i32 = arith.constant 5 : i32
    %129 = arith.index_cast %c5_i32 : i32 to index
    %c0_46 = arith.constant 0 : index
    %c0_47 = arith.constant 0 : index
    %130 = vector.load %arg5[%129, %c0_46, %c0_47] : memref<8x16x384xf32, #tpu.memory_space<vmem>>, vector<1x16x384xf32>
    %131 = vector.shape_cast %130 : vector<1x16x384xf32> to vector<16x384xf32>
    %132 = arith.truncf %127 : vector<16x128xf32> to vector<16x128xbf16>
    %cst_48 = arith.constant dense<0.000000e+00> : vector<16x256xf32>
    %133 = tpu.matmul %132, %22, %cst_48 {dimension_numbers = #tpu.dot_dimension_numbers<[1], [0], [0], [1], [0, 0, 1, 1], [], []>} : vector<16x128xbf16>, vector<128x256xbf16>, vector<16x256xf32> -> vector<16x256xf32>
    %134 = vector.extract_strided_slice %131 {offsets = [0, 0], sizes = [16, 256], strides = [1, 1]} : vector<16x384xf32> to vector<16x256xf32>
    %135 = arith.addf %133, %134 : vector<16x256xf32>
    %cst_49 = arith.constant 5.000000e-01 : f32
    %136 = vector.broadcast %cst_49 : f32 to vector<16x256xf32>
    %137 = arith.mulf %136, %135 : vector<16x256xf32>
    %138 = math.tanh %137 : vector<16x256xf32>
    %cst_50 = arith.constant 5.000000e-01 : f32
    %139 = vector.broadcast %cst_50 : f32 to vector<16x256xf32>
    %140 = arith.mulf %139, %138 : vector<16x256xf32>
    %cst_51 = arith.constant 5.000000e-01 : f32
    %141 = vector.broadcast %cst_51 : f32 to vector<16x256xf32>
    %142 = arith.addf %140, %141 : vector<16x256xf32>
    %143 = vector.extract_strided_slice %142 {offsets = [0, 0], sizes = [16, 128], strides = [1, 1]} : vector<16x256xf32> to vector<16x128xf32>
    %144 = vector.extract_strided_slice %142 {offsets = [0, 128], sizes = [16, 128], strides = [1, 1]} : vector<16x256xf32> to vector<16x128xf32>
    %145 = arith.mulf %144, %127 : vector<16x128xf32>
    %146 = arith.truncf %145 : vector<16x128xf32> to vector<16x128xbf16>
    %cst_52 = arith.constant dense<0.000000e+00> : vector<16x128xf32>
    %147 = tpu.matmul %146, %23, %cst_52 {dimension_numbers = #tpu.dot_dimension_numbers<[1], [0], [0], [1], [0, 0, 1, 1], [], []>} : vector<16x128xbf16>, vector<128x128xbf16>, vector<16x128xf32> -> vector<16x128xf32>
    %148 = vector.extract_strided_slice %131 {offsets = [0, 256], sizes = [16, 128], strides = [1, 1]} : vector<16x384xf32> to vector<16x128xf32>
    %149 = arith.addf %147, %148 : vector<16x128xf32>
    %150 = math.tanh %149 : vector<16x128xf32>
    %151 = arith.subf %150, %127 : vector<16x128xf32>
    %152 = arith.mulf %143, %151 : vector<16x128xf32>
    %153 = arith.addf %127, %152 : vector<16x128xf32>
    %154 = arith.addf %128, %153 : vector<16x128xf32>
    %c6_i32 = arith.constant 6 : i32
    %155 = arith.index_cast %c6_i32 : i32 to index
    %c0_53 = arith.constant 0 : index
    %c0_54 = arith.constant 0 : index
    %156 = vector.load %arg5[%155, %c0_53, %c0_54] : memref<8x16x384xf32, #tpu.memory_space<vmem>>, vector<1x16x384xf32>
    %157 = vector.shape_cast %156 : vector<1x16x384xf32> to vector<16x384xf32>
    %158 = arith.truncf %153 : vector<16x128xf32> to vector<16x128xbf16>
    %cst_55 = arith.constant dense<0.000000e+00> : vector<16x256xf32>
    %159 = tpu.matmul %158, %22, %cst_55 {dimension_numbers = #tpu.dot_dimension_numbers<[1], [0], [0], [1], [0, 0, 1, 1], [], []>} : vector<16x128xbf16>, vector<128x256xbf16>, vector<16x256xf32> -> vector<16x256xf32>
    %160 = vector.extract_strided_slice %157 {offsets = [0, 0], sizes = [16, 256], strides = [1, 1]} : vector<16x384xf32> to vector<16x256xf32>
    %161 = arith.addf %159, %160 : vector<16x256xf32>
    %cst_56 = arith.constant 5.000000e-01 : f32
    %162 = vector.broadcast %cst_56 : f32 to vector<16x256xf32>
    %163 = arith.mulf %162, %161 : vector<16x256xf32>
    %164 = math.tanh %163 : vector<16x256xf32>
    %cst_57 = arith.constant 5.000000e-01 : f32
    %165 = vector.broadcast %cst_57 : f32 to vector<16x256xf32>
    %166 = arith.mulf %165, %164 : vector<16x256xf32>
    %cst_58 = arith.constant 5.000000e-01 : f32
    %167 = vector.broadcast %cst_58 : f32 to vector<16x256xf32>
    %168 = arith.addf %166, %167 : vector<16x256xf32>
    %169 = vector.extract_strided_slice %168 {offsets = [0, 0], sizes = [16, 128], strides = [1, 1]} : vector<16x256xf32> to vector<16x128xf32>
    %170 = vector.extract_strided_slice %168 {offsets = [0, 128], sizes = [16, 128], strides = [1, 1]} : vector<16x256xf32> to vector<16x128xf32>
    %171 = arith.mulf %170, %153 : vector<16x128xf32>
    %172 = arith.truncf %171 : vector<16x128xf32> to vector<16x128xbf16>
    %cst_59 = arith.constant dense<0.000000e+00> : vector<16x128xf32>
    %173 = tpu.matmul %172, %23, %cst_59 {dimension_numbers = #tpu.dot_dimension_numbers<[1], [0], [0], [1], [0, 0, 1, 1], [], []>} : vector<16x128xbf16>, vector<128x128xbf16>, vector<16x128xf32> -> vector<16x128xf32>
    %174 = vector.extract_strided_slice %157 {offsets = [0, 256], sizes = [16, 128], strides = [1, 1]} : vector<16x384xf32> to vector<16x128xf32>
    %175 = arith.addf %173, %174 : vector<16x128xf32>
    %176 = math.tanh %175 : vector<16x128xf32>
    %177 = arith.subf %176, %153 : vector<16x128xf32>
    %178 = arith.mulf %169, %177 : vector<16x128xf32>
    %179 = arith.addf %153, %178 : vector<16x128xf32>
    %180 = arith.addf %154, %179 : vector<16x128xf32>
    %c7_i32 = arith.constant 7 : i32
    %181 = arith.index_cast %c7_i32 : i32 to index
    %c0_60 = arith.constant 0 : index
    %c0_61 = arith.constant 0 : index
    %182 = vector.load %arg5[%181, %c0_60, %c0_61] : memref<8x16x384xf32, #tpu.memory_space<vmem>>, vector<1x16x384xf32>
    %183 = vector.shape_cast %182 : vector<1x16x384xf32> to vector<16x384xf32>
    %184 = arith.truncf %179 : vector<16x128xf32> to vector<16x128xbf16>
    %cst_62 = arith.constant dense<0.000000e+00> : vector<16x256xf32>
    %185 = tpu.matmul %184, %22, %cst_62 {dimension_numbers = #tpu.dot_dimension_numbers<[1], [0], [0], [1], [0, 0, 1, 1], [], []>} : vector<16x128xbf16>, vector<128x256xbf16>, vector<16x256xf32> -> vector<16x256xf32>
    %186 = vector.extract_strided_slice %183 {offsets = [0, 0], sizes = [16, 256], strides = [1, 1]} : vector<16x384xf32> to vector<16x256xf32>
    %187 = arith.addf %185, %186 : vector<16x256xf32>
    %cst_63 = arith.constant 5.000000e-01 : f32
    %188 = vector.broadcast %cst_63 : f32 to vector<16x256xf32>
    %189 = arith.mulf %188, %187 : vector<16x256xf32>
    %190 = math.tanh %189 : vector<16x256xf32>
    %cst_64 = arith.constant 5.000000e-01 : f32
    %191 = vector.broadcast %cst_64 : f32 to vector<16x256xf32>
    %192 = arith.mulf %191, %190 : vector<16x256xf32>
    %cst_65 = arith.constant 5.000000e-01 : f32
    %193 = vector.broadcast %cst_65 : f32 to vector<16x256xf32>
    %194 = arith.addf %192, %193 : vector<16x256xf32>
    %195 = vector.extract_strided_slice %194 {offsets = [0, 0], sizes = [16, 128], strides = [1, 1]} : vector<16x256xf32> to vector<16x128xf32>
    %196 = vector.extract_strided_slice %194 {offsets = [0, 128], sizes = [16, 128], strides = [1, 1]} : vector<16x256xf32> to vector<16x128xf32>
    %197 = arith.mulf %196, %179 : vector<16x128xf32>
    %198 = arith.truncf %197 : vector<16x128xf32> to vector<16x128xbf16>
    %cst_66 = arith.constant dense<0.000000e+00> : vector<16x128xf32>
    %199 = tpu.matmul %198, %23, %cst_66 {dimension_numbers = #tpu.dot_dimension_numbers<[1], [0], [0], [1], [0, 0, 1, 1], [], []>} : vector<16x128xbf16>, vector<128x128xbf16>, vector<16x128xf32> -> vector<16x128xf32>
    %200 = vector.extract_strided_slice %183 {offsets = [0, 256], sizes = [16, 128], strides = [1, 1]} : vector<16x384xf32> to vector<16x128xf32>
    %201 = arith.addf %199, %200 : vector<16x128xf32>
    %202 = math.tanh %201 : vector<16x128xf32>
    %203 = arith.subf %202, %179 : vector<16x128xf32>
    %204 = arith.mulf %195, %203 : vector<16x128xf32>
    %205 = arith.addf %179, %204 : vector<16x128xf32>
    %206 = arith.addf %180, %205 : vector<16x128xf32>
    %c7_i32_67 = arith.constant 7 : i32
    %207 = vector.shape_cast %206 : vector<16x128xf32> to vector<4x4x128xf32>
    %cst_68 = arith.constant dense<0.000000e+00> : vector<4x128xf32>
    %208 = vector.multi_reduction <add>, %207, %cst_68 [1] : vector<4x4x128xf32> to vector<4x128xf32>
    %209 = arith.addf %8, %208 : vector<4x128xf32>
    %cst_69 = arith.constant 0.0344827585 : f32
    %210 = vector.broadcast %cst_69 : f32 to vector<4x128xf32>
    %211 = arith.mulf %209, %210 : vector<4x128xf32>
    %c0_70 = arith.constant 0 : index
    %c0_71 = arith.constant 0 : index
    %212 = vector.load %arg4[%c0_70, %c0_71] : memref<4x128xf32, #tpu.memory_space<vmem>>, vector<4x128xf32>
    tpu.vector_store %arg4[%c0_70, %c0_71], %211 {strides = array<i32>} : memref<4x128xf32, #tpu.memory_space<vmem>>, vector<4x128xf32>,
    return
  }
}

</mosaic_0001>

<bundles_post_ra>
// kernel: fgru_pallas.1
= control target key start
LH: loop header
LB: loop body
LE: loop exit
PB: predicated region body
PF: predicated region fallthrough
CT: control target
= control target key end

     0   :  { %v72_v3 = vlaneseq  ;;  %v2288_v9 = vmov 1983009808   ;;  %v2289_v18 = vmov 0   ;;  %s3133_s0 = inlined_call_operand.vmem [shape: bf16[8,4,128], index: 0, kind: input, shape index: {}]   ;;  %s3134_s1 = inlined_call_operand.vmem [shape: bf16[128,384], index: 1, kind: input, shape index: {}]   ;;  %s3135_s2 = inlined_call_operand.vmem [shape: f32[2,384], index: 2, kind: input, shape index: {}]   ;;  %s3136_s3 = inlined_call_operand.vmem [shape: bf16[128,384], index: 3, kind: input, shape index: {}]   ;;  %s3137_s4 = inlined_call_operand.hbm [shape: f32[4,128], index: 4, kind: output, shape index: {}]  }
   0x1   :  { %v2090_v0 = vld [vmem:[%s3134_s1 + $0x8] ss:$12 sps:$4 sm:$0xff]   ;;  %v2091_v1 = vld [vmem:[%s3134_s1 + $0x20] ss:$12 sps:$4 sm:$0xff]   ;;  %v2092_v2 = vld [vmem:[%s3134_s1 + $0x38] ss:$12 sps:$4 sm:$0xff]   ;;  %v70_v10 = vunpack.c.l.s4 %v2288_v9  ;;  %263 = vmatprep.mubr.bf16.mxu0 %v2289_v18 }
   0x2   :  { %1924 = vmatprep.subr.bf16.mxu1 %v2090_v0  ;;  %v2093_v4 = vld [vmem:[%s3134_s1 + $0x50] ss:$12 sps:$4 sm:$0xff]   ;;  %v19_v5 = vld [vmem:[%s3133_s0] sm:$0x3]  ;;  %v20_v6 = vld [vmem:[%s3133_s0 + $0x2] sm:$0x3] }
   0x3   :  { %1925 = vmatpush3.bf16.msra.mxu1 %v2090_v0  ;;  %v21_v7 = vld [vmem:[%s3133_s0 + $0x4] sm:$0x3]  ;;  %v22_v8 = vld [vmem:[%s3133_s0 + $0x6] sm:$0x3]  ;;  %v2343_v11 = vshrl.u32 %v72_v3, 7  ;;  %v67_v14 = vcombine.low %v19_v5, %v20_v6  ;;  %v71_v16 = vunpack.c.0.s8 %v70_v10 }
   0x4   :  { %1926 = vmatprep.subr.bf16.mxu1 %v2091_v1  ;;  %v2094_v12 = vld [vmem:[%s3134_s1 + $0x68] ss:$12 sps:$4 sm:$0xff]   ;;  %v2098_v13 = vld [vmem:[%s3134_s1 + $0x4] ss:$12 sps:$4 sm:$0xff]   ;;  %v68_v15 = vcombine.low %v21_v7, %v22_v8  ;;  %v2100_v17 = vld [vmem:[%s3134_s1] ss:$12 sps:$4 sm:$0xff]  }
   0x5   :  { %231 = vmatprep.subr.bf16.mxu0 %v2098_v13  ;;  %v2101_v19 = vld [vmem:[%s3134_s1 + $0x1c] ss:$12 sps:$4 sm:$0xff]   ;;  %v74_v20 = vsub.s32 %v71_v16, %v2343_v11  ;;  %v2103_v21 = vld [vmem:[%s3134_s1 + $0x18] ss:$12 sps:$4 sm:$0xff]   ;;  %v2104_v22 = vld [vmem:[%s3134_s1 + $0x34] ss:$12 sps:$4 sm:$0xff]  }
   0x6   :  { %232 = vmatpush1.bf16.msra.mxu0 %v2100_v17  ;;  %v2095_v23 = vld [vmem:[%s3134_s1 + $0x80] ss:$12 sps:$4 sm:$0xff]   ;;  %v23_v26 = vld [vmem:[%s3133_s0 + $0x8] sm:$0x3]  ;;  %v24_v27 = vld [vmem:[%s3133_s0 + $0xa] sm:$0x3] }
   0x7   :  { %1927 = vmatpush3.bf16.msra.mxu1 %v2091_v1  ;;  %233 = vmatprep.subr.bf16.mxu0 %v2101_v19  ;;  %v75_v24 = vrot.slane %v67_v14, %v74_v20  ;;  %v82_v25 = vrot.slane %v68_v15, %v74_v20  ;;  %v25_v28 = vld [vmem:[%s3133_s0 + $0xc] sm:$0x3]  ;;  %v26_v30 = vld [vmem:[%s3133_s0 + $0xe] sm:$0x3]  ;;  %v2106_v31 = vld [vmem:[%s3134_s1 + $0x30] ss:$12 sps:$4 sm:$0xff]   ;;  %v84_v35 = vcombine.low %v23_v26, %v24_v27 }
   0x8   :  { %1928 = vmatprep.subr.bf16.mxu1 %v2092_v2  ;;  %v2107_v32 = vld [vmem:[%s3134_s1 + $0x4c] ss:$12 sps:$4 sm:$0xff]   ;;  %v2097_v34 = vld [vmem:[%s3134_s1 + $0xb0] ss:$12 sps:$4 sm:$0xff]   ;;  %v85_v36 = vcombine.low %v25_v28, %v26_v30  ;;  %v2109_v37 = vld [vmem:[%s3134_s1 + $0x48] ss:$12 sps:$4 sm:$0xff]  }
   0x9   :  { %v83_v29 = vcombine.low %v75_v24, %v82_v25  ;;  %v2096_v33 = vld [vmem:[%s3134_s1 + $0x98] ss:$12 sps:$4 sm:$0xff]   ;;  %v2112_v39 = vld [vmem:[%s3134_s1 + $0x60] ss:$12 sps:$4 sm:$0xff]   ;;  %v2113_v40 = vld [vmem:[%s3134_s1 + $0x7c] ss:$12 sps:$4 sm:$0xff]   ;;  %v92_v41 = vrot.slane %v84_v35, %v74_v20 }
   0xa   :  { %234 = vmatpush1.bf16.msra.mxu0 %v2103_v21  ;;  %v2110_v38 = vld [vmem:[%s3134_s1 + $0x64] ss:$12 sps:$4 sm:$0xff]   ;;  %v99_v42 = vrot.slane %v85_v36, %v74_v20  ;;  %v2116_v44 = vld [vmem:[%s3134_s1 + $0x94] ss:$12 sps:$4 sm:$0xff]  }
   0xb   :  { %1929 = vmatpush3.bf16.msra.mxu1 %v2092_v2  ;;  %235 = vmatprep.subr.bf16.mxu0 %v2104_v22  ;;  %v2115_v43 = vld [vmem:[%s3134_s1 + $0x78] ss:$12 sps:$4 sm:$0xff]  }
   0xc   :  { %1930 = vmatprep.subr.bf16.mxu1 %v2093_v4  ;;  %1940 = vmatprep.mubr.bf16.mxu1 %v83_v29  ;;  %v100_v45 = vcombine.low %v92_v41, %v99_v42 }
   0xe   :  { %236 = vmatpush1.bf16.msra.mxu0 %v2106_v31 }
   0xf   :  { %1931 = vmatpush3.bf16.msra.mxu1 %v2093_v4  ;;  %237 = vmatprep.subr.bf16.mxu0 %v2107_v32 }
  0x10   :  { %1932 = vmatprep.subr.bf16.mxu1 %v2094_v12 }
  0x12   :  { %238 = vmatpush1.bf16.msra.mxu0 %v2109_v37 }
  0x13   :  { %1933 = vmatpush3.bf16.msra.mxu1 %v2094_v12  ;;  %239 = vmatprep.subr.bf16.mxu0 %v2110_v38 }
  0x14   :  { %1934 = vmatprep.subr.bf16.mxu1 %v2095_v23 }
  0x16   :  { %240 = vmatpush1.bf16.msra.mxu0 %v2112_v39 }
  0x17   :  { %1935 = vmatpush3.bf16.msra.mxu1 %v2095_v23  ;;  %241 = vmatprep.subr.bf16.mxu0 %v2113_v40 }
  0x18   :  { %1936 = vmatprep.subr.bf16.mxu1 %v2096_v33 }
  0x1b   :  { %1937 = vmatpush3.bf16.msra.mxu1 %v2096_v33 }
  0x1c   :  { %1938 = vmatprep.subr.bf16.mxu1 %v2097_v34 }
  0x1f   :  { %1939 = vmatpush3.bf16.msra.mxu1 %v2097_v34 }
  0x20   :  { %9 = vsyncpa [#allocation4], 0  ;;  %242 = vmatpush1.bf16.msra.mxu0 %v2115_v43  ;;  %v2118_v46 = vld [vmem:[%s3134_s1 + $0x90] ss:$12 sps:$4 sm:$0xff]   ;;  %v2119_v47 = vld [vmem:[%s3134_s1 + $0xac] ss:$12 sps:$4 sm:$0xff]  }
  0x21   :  { %243 = vmatprep.subr.bf16.mxu0 %v2116_v44  ;;  %v2121_v48 = vld [vmem:[%s3134_s1 + $0xa8] ss:$12 sps:$4 sm:$0xff]   ;;  %v2422_v49 = vld [vmem:[%s3136_s3 + $0x4] ss:$12 sps:$4 sm:$0xff]   ;;  %v2427_v50 = vld [vmem:[%s3136_s3] ss:$12 sps:$4 sm:$0xff]  }
  0x22   :  { %1941 = vmatmul.mubr.bf16.vlgmr.msra.gmra.mrb[0].mxu1 %v100_v45  ;;  %v2436_v51 = vld [vmem:[%s3136_s3 + $0x1c] ss:$12 sps:$4 sm:$0xff]   ;;  %v2441_v52 = vld [vmem:[%s3136_s3 + $0x18] ss:$12 sps:$4 sm:$0xff]   ;;  %v2448_v53 = vld [vmem:[%s3136_s3 + $0x34] ss:$12 sps:$4 sm:$0xff]  }
  0x23   :  { %v2453_v54 = vld [vmem:[%s3136_s3 + $0x30] ss:$12 sps:$4 sm:$0xff]   ;;  %v2460_v55 = vld [vmem:[%s3136_s3 + $0x4c] ss:$12 sps:$4 sm:$0xff]   ;;  %v2465_v56 = vld [vmem:[%s3136_s3 + $0x48] ss:$12 sps:$4 sm:$0xff]  }
  0x24   :  { %244 = vmatpush1.bf16.msra.mxu0 %v2118_v46  ;;  %v2472_v57 = vld [vmem:[%s3136_s3 + $0x64] ss:$12 sps:$4 sm:$0xff]   ;;  %v2477_v58 = vld [vmem:[%s3136_s3 + $0x60] ss:$12 sps:$4 sm:$0xff]   ;;  %v2484_v59 = vld [vmem:[%s3136_s3 + $0x7c] ss:$12 sps:$4 sm:$0xff]  }
  0x25   :  { %245 = vmatprep.subr.bf16.mxu0 %v2119_v47  ;;  %v2489_v60 = vld [vmem:[%s3136_s3 + $0x78] ss:$12 sps:$4 sm:$0xff]   ;;  %v2496_v61 = vld [vmem:[%s3136_s3 + $0x94] ss:$12 sps:$4 sm:$0xff]   ;;  %v2501_v62 = vld [vmem:[%s3136_s3 + $0x90] ss:$12 sps:$4 sm:$0xff]  }
  0x26   :  { %v2507_v63 = vld [vmem:[%s3136_s3 + $0xac] ss:$12 sps:$4 sm:$0xff]   ;;  %v2513_v0 = vld [vmem:[%s3136_s3 + $0xa8] ss:$12 sps:$4 sm:$0xff]   ;;  %v2290_v2 = vmov 0.0   ;;  %v353_v3 = vsub.s32 2, %v2343_v11 }
  0x27   :  { %v2521_v1 = vld [vmem:[%s3136_s3 + $0x8] ss:$12 sps:$4 sm:$0xff]   ;;  %1944 = vmatprep.subr.bf16.mxu1 %v2290_v2  ;;  %v1806_v4 = vld [vmem:[%s3135_s2 + $0x1] ss:$2 sm:$0x7]  ;;  %v349_v25 = vsub.s32 1, %v2343_v11 }
  0x28   :  { %246 = vmatpush1.bf16.msra.mxu0 %v2121_v48  ;;  %1945 = vmatpush3.bf16.msra.mxu1 %v2521_v1  ;;  %v354_v5 = vrot.slane %v1806_v4, %v353_v3  ;;  %v1805_v6 = vld [vmem:[%s3135_s2 + $0x4] ss:$0 sm:$0xff]  ;;  %v2291_v16 = vmov 1966171168   ;;  %v2535_v26 = vsub.s32 0, %v2343_v11  ;;  %vm2292_vm0 = vmmov 0  }
  0x29   :  { %719 = vmatprep.subr.bf16.mxu0 %v2422_v49  ;;  %1946 = vmatprep.subr.bf16.mxu1 %v2290_v2  ;;  %v552_v17 = vunpack.c.l.s4 %v2291_v16  ;;  %v2538_v31 = vrot.slane %v1806_v4, %v349_v25  ;;  %vm1724_vm1 = vcmask 1043456   ;;  %vm1757_vm2 = vcmask 1041409  }
  0x2a   :  { %v346_v30 = vrot.slane %v1806_v4, %v2535_v26  ;;  %1960 = vmatprep.mubr.msk.bf16.mxu1 %vm2292_vm0, %v2290_v2  ;;  %vm1759_vm3 = vcmask 1042434   ;;  %vm1761_vm4 = vcmask 1043459  }
  0x2b   :  { %264 = vmatmul.mubr.bf16.vlgmr.msra.gmra.mrb[0].mxu0 %v83_v29  ;;  %v553_v29 = vunpack.c.0.s8 %v552_v17 }
  0x2c   :  { %720 = vmatpush1.bf16.msra.mxu0 %v2427_v50  ;;  %273 = vmatprep.mubr.bf16.mxu0 %v2289_v18 }
  0x2d   :  { %721 = vmatprep.subr.bf16.mxu0 %v2436_v51  ;;  %v556_v32 = vsub.s32 %v553_v29, %v2343_v11 }
  0x30   :  { %722 = vmatpush1.bf16.msra.mxu0 %v2441_v52 }
  0x31   :  { %723 = vmatprep.subr.bf16.mxu0 %v2448_v53 }
  0x33   :  { %274 = vmatmul.mubr.bf16.gmra.mrb[4].mxu0 %v100_v45 }
  0x34   :  { %751 = vmatprep.mubr.bf16.mxu0 %v2289_v18  ;;  %724 = vmatpush1.bf16.msra.mxu0 %v2453_v54 }
  0x35   :  { %725 = vmatprep.subr.bf16.mxu0 %v2460_v55 }
  0x38   :  { %726 = vmatpush1.bf16.msra.mxu0 %v2465_v56 }
  0x39   :  { %727 = vmatprep.subr.bf16.mxu0 %v2472_v57 }
  0x3c   :  { %728 = vmatpush1.bf16.msra.mxu0 %v2477_v58 }
  0x3d   :  { %729 = vmatprep.subr.bf16.mxu0 %v2484_v59 }
  0x40   :  { %730 = vmatpush1.bf16.msra.mxu0 %v2489_v60 }
  0x41   :  { %731 = vmatprep.subr.bf16.mxu0 %v2496_v61 }
  0x44   :  { %732 = vmatpush1.bf16.msra.mxu0 %v2501_v62 }
  0x45   :  { %733 = vmatprep.subr.bf16.mxu0 %v2507_v63 }
  0x48   :  { %734 = vmatpush1.bf16.msra.mxu0 %v2513_v0 }
  0x49   :  { %906 = vmatprep.subr.bf16.mxu0 %v2422_v49 }
  0xf5   :  { %v1942_v7 = vpop.f32.mrb[0].mxu1 }
  0xf6   :  { %v366_v8 = vadd.f32 %v1942_v7, %v354_v5  ;;  %v318_v9 = vpop.f32.mrb[1].mxu1 }
  0xf7   :  { %v338_v10 = vadd.f32 %v1805_v6, %v318_v9  ;;  %v360_v12 = vadd.f32 %v354_v5, %v318_v9  ;;  %v1943_v13 = vpop.f32.mrb[2].mxu1 }
  0xf8   :  { %v390_v14 = vcombine.high %v366_v8, %v366_v8  ;;  %436 = vst [vmem:[#allocation2 + $0xd0] sm:$0xf] %v366_v8  ;;  %v455_v15 = vcombine.low %v366_v8, %v366_v8  ;;  %516 = vst [vmem:[#allocation2 + $0xe8] sm:$0xf] %v366_v8  ;;  %v369_v19 = vadd.f32 %v1943_v13, %v354_v5  ;;  %v321_v20 = vpop.f32.mrb[3].mxu1 }
  0xf9   :  { %2154 = vtanh.f32 %v338_v10  ;;  %v384_v21 = vcombine.high %v360_v12, %v360_v12  ;;  %v363_v22 = vadd.f32 %v354_v5, %v321_v20 }
  0xfa   :  { %439 = vst [vmem:[#allocation2 + $0x100] sm:$0xff] %v390_v14   ;;  %492 = vst [vmem:[#allocation2 + $0xd0] sm:$0xf0] %v455_v15  ;;  %v393_v23 = vcombine.high %v369_v19, %v369_v19  ;;  %v459_v24 = vcombine.low %v369_v19, %v369_v19 }
  0xfb   :  { %519 = vst [vmem:[#allocation2 + $0x118] sm:$0xff] %v390_v14   ;;  %540 = vst [vmem:[#allocation2 + $0xe8] sm:$0xf0] %v455_v15  ;;  %v387_v27 = vcombine.high %v363_v22, %v363_v22  ;;  %v451_v28 = vcombine.low %v363_v22, %v363_v22 }
  0xfc   :  { %442 = vst [vmem:[#allocation2 + $0x130] sm:$0xf] %v369_v19  ;;  %522 = vst [vmem:[#allocation2 + $0x148] sm:$0xf] %v369_v19 }
  0xfd   :  { %427 = vst [vmem:[#allocation2 + $0x40] sm:$0xff] %v384_v21   ;;  %507 = vst [vmem:[#allocation2 + $0x58] sm:$0xff] %v384_v21  }
  0xfe   :  { %430 = vst [vmem:[#allocation2 + $0x70] sm:$0xf] %v363_v22  ;;  %510 = vst [vmem:[#allocation2 + $0x88] sm:$0xf] %v363_v22  ;;  %v265_v33 = vpop.f32.mrb[0].mxu0 }
  0xff   :  { %445 = vst [vmem:[#allocation2 + $0x160] sm:$0xff] %v393_v23   ;;  %498 = vst [vmem:[#allocation2 + $0x130] sm:$0xf0] %v459_v24  ;;  %v358_v34 = vadd.f32 %v346_v30, %v265_v33  ;;  %v267_v35 = vpop.f32.mrb[1].mxu0 }
 0x100   :  { %525 = vst [vmem:[#allocation2 + $0x178] sm:$0xff] %v393_v23   ;;  %546 = vst [vmem:[#allocation2 + $0x148] sm:$0xf0] %v459_v24  ;;  %v359_v36 = vadd.f32 %v2538_v31, %v267_v35  ;;  %v269_v37 = vpop.f32.mrb[2].mxu0 }
 0x101   :  { %433 = vst [vmem:[#allocation2 + $0xa0] sm:$0xff] %v387_v27   ;;  %486 = vst [vmem:[#allocation2 + $0x70] sm:$0xf0] %v451_v28  ;;  %v1816_v39 = vcombine.high %v358_v34, %v358_v34  ;;  %v361_v40 = vadd.f32 %v346_v30, %v269_v37  ;;  %v271_v41 = vpop.f32.mrb[3].mxu0 }
 0x102   :  { %513 = vst [vmem:[#allocation2 + $0xb8] sm:$0xff] %v387_v27   ;;  %534 = vst [vmem:[#allocation2 + $0x88] sm:$0xf0] %v451_v28  ;;  %v383_v43 = vcombine.high %v358_v34, %v359_v36  ;;  %v1808_v44 = vcombine.high %v359_v36, %v359_v36  ;;  %v362_v11 = vadd.f32 %v2538_v31, %v271_v41  ;;  %v2597_v41 = vld [vmem:[%s3136_s3 + $0x38] ss:$12 sps:$4 sm:$0xff]  }
 0x103   :  { %v2542_v38 = vpop.eup %2154  ;;  %481 = vst [vmem:[#allocation2 + $0x30] sm:$0xf0] %v1816_v39  ;;  %529 = vst [vmem:[#allocation2 + $0x48] sm:$0xf0] %v1816_v39  ;;  %v1818_v45 = vcombine.low %v361_v40, %v361_v40  ;;  %v1819_v46 = vcombine.high %v361_v40, %v361_v40 }
 0x104   :  { %v557_v42 = vrot.slane %v2542_v38, %v556_v32  ;;  %425 = vst [vmem:[#allocation2 + $0x30] ss:$12 sps:$4 sm:$0xff] %v383_v43   ;;  %505 = vst [vmem:[#allocation2 + $0x48] ss:$12 sps:$4 sm:$0xff] %v383_v43   ;;  %v385_v3 = vcombine.low %v361_v40, %v362_v11  ;;  %v386_v4 = vcombine.high %v361_v40, %v362_v11  ;;  %v2611_v43 = vld [vmem:[%s3136_s3 + $0x68] ss:$12 sps:$4 sm:$0xff]  }
 0x105   :  { %426 = vst [vmem:[#allocation2 + $0x38] sm:$0xf] %v1808_v44  ;;  %506 = vst [vmem:[#allocation2 + $0x50] sm:$0xf] %v1808_v44  ;;  %v1809_v5 = vcombine.low %v362_v11, %v362_v11  ;;  %v1810_v6 = vcombine.high %v362_v11, %v362_v11  ;;  %v2618_v44 = vld [vmem:[%s3136_s3 + $0x80] ss:$12 sps:$4 sm:$0xff]  }
 0x106   :  { %v558_v47 = vcombine.high %v557_v42, %v557_v42  ;;  %v565_v48 = vrot.slane %v557_v42, %v556_v32  ;;  %484 = vst [vmem:[#allocation2 + $0x60] sm:$0xf0] %v1818_v45  ;;  %487 = vst [vmem:[#allocation2 + $0x90] sm:$0xf0] %v1819_v46  ;;  %v275_v9 = vpop.f32.mrb[4].mxu0 }
 0x107   :  { %532 = vst [vmem:[#allocation2 + $0x78] sm:$0xf0] %v1818_v45  ;;  %535 = vst [vmem:[#allocation2 + $0xa8] sm:$0xf0] %v1819_v46  ;;  %v364_v10 = vadd.f32 %v346_v30, %v275_v9  ;;  %v277_v12 = vpop.f32.mrb[5].mxu0 }
 0x108   :  { %v572_v7 = vrot.slane %v558_v47, %v556_v32  ;;  %v573_v8 = vcombine.high %v565_v48, %v565_v48  ;;  %428 = vst [vmem:[#allocation2 + $0x60] ss:$12 sps:$4 sm:$0xff] %v385_v3   ;;  %429 = vst [vmem:[#allocation2 + $0x68] sm:$0xf] %v1809_v5  ;;  %v365_v15 = vadd.f32 %v2538_v31, %v277_v12  ;;  %v279_v16 = vpop.f32.mrb[6].mxu0 }
 0x109   :  { %431 = vst [vmem:[#allocation2 + $0x90] ss:$12 sps:$4 sm:$0xff] %v386_v4   ;;  %432 = vst [vmem:[#allocation2 + $0x98] sm:$0xf] %v1810_v6  ;;  %v2551_v17 = vrot.slane %v565_v48, %v2535_v26  ;;  %v1821_v19 = vcombine.low %v364_v10, %v364_v10  ;;  %v1822_v20 = vcombine.high %v364_v10, %v364_v10  ;;  %v281_v22 = vpop.f32.mrb[7].mxu0 }
 0x10a   :  { %508 = vst [vmem:[#allocation2 + $0x78] ss:$12 sps:$4 sm:$0xff] %v385_v3   ;;  %509 = vst [vmem:[#allocation2 + $0x80] sm:$0xf] %v1809_v5  ;;  %v574_v13 = vcombine.high %v572_v7, %v572_v7  ;;  %v2547_v14 = vrot.slane %v572_v7, %v2535_v26  ;;  %v367_v21 = vadd.f32 %v346_v30, %v279_v16  ;;  %v2604_v42 = vld [vmem:[%s3136_s3 + $0x50] ss:$12 sps:$4 sm:$0xff]  }
 0x10b   :  { %511 = vst [vmem:[#allocation2 + $0xa8] ss:$12 sps:$4 sm:$0xff] %v386_v4   ;;  %512 = vst [vmem:[#allocation2 + $0xb0] sm:$0xf] %v1810_v6  ;;  %v2554_v23 = vrot.slane %v573_v8, %v2535_v26  ;;  %v388_v25 = vcombine.low %v364_v10, %v365_v15  ;;  %v389_v27 = vcombine.high %v364_v10, %v365_v15  ;;  %v2625_v45 = vld [vmem:[%s3136_s3 + $0x98] ss:$12 sps:$4 sm:$0xff]  }
 0x10c   :  { %v2557_v24 = vrot.slane %v574_v13, %v2535_v26  ;;  %490 = vst [vmem:[#allocation2 + $0xc0] sm:$0xf0] %v1821_v19  ;;  %493 = vst [vmem:[#allocation2 + $0xf0] sm:$0xf0] %v1822_v20  ;;  %v1811_v28 = vcombine.low %v365_v15, %v365_v15  ;;  %v1812_v29 = vcombine.high %v365_v15, %v365_v15  ;;  %v2632_v46 = vld [vmem:[%s3136_s3 + $0xb0] ss:$12 sps:$4 sm:$0xff]  }
 0x10d   :  { %538 = vst [vmem:[#allocation2 + $0xd8] sm:$0xf0] %v1821_v19  ;;  %541 = vst [vmem:[#allocation2 + $0x108] sm:$0xf0] %v1822_v20  ;;  %v1824_v32 = vcombine.low %v367_v21, %v367_v21  ;;  %v1825_v33 = vcombine.high %v367_v21, %v367_v21  ;;  %v2561_v30 = vcombine.low %v2551_v17, %v2547_v14  ;;  %v629_v47 = vld [vmem:[#allocation2 + $0x38] sm:$0xff]  ;;  %v632_v5 = vld [vmem:[#allocation2 + $0x50] sm:$0xff] }
 0x10e   :  { %v2565_v34 = vcombine.low %v2554_v23, %v2557_v24  ;;  %434 = vst [vmem:[#allocation2 + $0xc0] ss:$12 sps:$4 sm:$0xff] %v388_v25   ;;  %437 = vst [vmem:[#allocation2 + $0xf0] ss:$12 sps:$4 sm:$0xff] %v389_v27   ;;  %v368_v26 = vadd.f32 %v2538_v31, %v281_v22  ;;  %v2590_v31 = vld [vmem:[%s3136_s3 + $0x20] ss:$12 sps:$4 sm:$0xff]  }
 0x10f   :  { %514 = vst [vmem:[#allocation2 + $0xd8] ss:$12 sps:$4 sm:$0xff] %v388_v25   ;;  %517 = vst [vmem:[#allocation2 + $0x108] ss:$12 sps:$4 sm:$0xff] %v389_v27   ;;  %1947 = vmatpush3.bf16.msra.mxu1 %v2590_v31  ;;  %v628_v25 = vld [vmem:[#allocation2 + $0x30] sm:$0xff] }
 0x110   :  { %435 = vst [vmem:[#allocation2 + $0xc8] sm:$0xf] %v1811_v28  ;;  %438 = vst [vmem:[#allocation2 + $0xf8] sm:$0xf] %v1812_v29  ;;  %v638_v35 = vpack.c.bf16 %v2565_v34, %v2561_v30  ;;  %v391_v36 = vcombine.low %v367_v21, %v368_v26  ;;  %v392_v37 = vcombine.high %v367_v21, %v368_v26  ;;  %1948 = vmatprep.subr.bf16.mxu1 %v2290_v2 }
 0x111   :  { %515 = vst [vmem:[#allocation2 + $0xe0] sm:$0xf] %v1811_v28  ;;  %518 = vst [vmem:[#allocation2 + $0x110] sm:$0xf] %v1812_v29  ;;  %v1813_v39 = vcombine.low %v368_v26, %v368_v26  ;;  %v1814_v40 = vcombine.high %v368_v26, %v368_v26  ;;  %v631_v28 = vld [vmem:[#allocation2 + $0x48] sm:$0xff]  ;;  %v630_v26 = vld [vmem:[#allocation2 + $0x40] sm:$0xff] }
 0x112   :  { %496 = vst [vmem:[#allocation2 + $0x120] sm:$0xf0] %v1824_v32  ;;  %499 = vst [vmem:[#allocation2 + $0x150] sm:$0xf0] %v1825_v33  ;;  %752 = vmatmul.mubr.bf16.vlgmr.msra.gmra.mrb[8].mxu0 %v638_v35 }
 0x113   :  { %544 = vst [vmem:[#allocation2 + $0x138] sm:$0xf0] %v1824_v32  ;;  %547 = vst [vmem:[#allocation2 + $0x168] sm:$0xf0] %v1825_v33  ;;  %907 = vmatpush1.bf16.msra.mxu0 %v2427_v50  ;;  %938 = vmatprep.mubr.bf16.mxu0 %v2289_v18 }
 0x114   :  { %440 = vst [vmem:[#allocation2 + $0x120] ss:$12 sps:$4 sm:$0xff] %v391_v36   ;;  %441 = vst [vmem:[#allocation2 + $0x128] sm:$0xf] %v1813_v39  ;;  %908 = vmatprep.subr.bf16.mxu0 %v2436_v51  ;;  %1949 = vmatpush3.bf16.msra.mxu1 %v2597_v41 }
 0x115   :  { %443 = vst [vmem:[#allocation2 + $0x150] ss:$12 sps:$4 sm:$0xff] %v392_v37   ;;  %520 = vst [vmem:[#allocation2 + $0x138] ss:$12 sps:$4 sm:$0xff] %v391_v36   ;;  %1950 = vmatprep.subr.bf16.mxu1 %v2290_v2 }
 0x116   :  { %521 = vst [vmem:[#allocation2 + $0x140] sm:$0xf] %v1813_v39  ;;  %523 = vst [vmem:[#allocation2 + $0x168] ss:$12 sps:$4 sm:$0xff] %v392_v37   ;;  %v633_v39 = vld [vmem:[#allocation2 + $0x58] sm:$0xff] }
 0x117   :  { %444 = vst [vmem:[#allocation2 + $0x158] sm:$0xf] %v1814_v40  ;;  %524 = vst [vmem:[#allocation2 + $0x170] sm:$0xf] %v1814_v40  ;;  %909 = vmatpush1.bf16.msra.mxu0 %v2441_v52 }
 0x118   :  { %910 = vmatprep.subr.bf16.mxu0 %v2448_v53  ;;  %1951 = vmatpush3.bf16.msra.mxu1 %v2604_v42 }
 0x119   :  { %1952 = vmatprep.subr.bf16.mxu1 %v2290_v2 }
 0x11b   :  { %911 = vmatpush1.bf16.msra.mxu0 %v2453_v54 }
 0x11c   :  { %912 = vmatprep.subr.bf16.mxu0 %v2460_v55  ;;  %1953 = vmatpush3.bf16.msra.mxu1 %v2611_v43 }
 0x11d   :  { %1954 = vmatprep.subr.bf16.mxu1 %v2290_v2 }
 0x11f   :  { %913 = vmatpush1.bf16.msra.mxu0 %v2465_v56 }
 0x120   :  { %914 = vmatprep.subr.bf16.mxu0 %v2472_v57  ;;  %1955 = vmatpush3.bf16.msra.mxu1 %v2618_v44 }
 0x121   :  { %1956 = vmatprep.subr.bf16.mxu1 %v2290_v2 }
 0x123   :  { %915 = vmatpush1.bf16.msra.mxu0 %v2477_v58 }
 0x124   :  { %916 = vmatprep.subr.bf16.mxu0 %v2484_v59  ;;  %1957 = vmatpush3.bf16.msra.mxu1 %v2625_v45 }
 0x125   :  { %1958 = vmatprep.subr.bf16.mxu1 %v2290_v2 }
 0x127   :  { %917 = vmatpush1.bf16.msra.mxu0 %v2489_v60 }
 0x128   :  { %918 = vmatprep.subr.bf16.mxu0 %v2496_v61  ;;  %1959 = vmatpush3.bf16.msra.mxu1 %v2632_v46 }
 0x129   :  { %1964 = vmatprep.subr.bf16.mxu1 %v2290_v2 }
 0x12b   :  { %919 = vmatpush1.bf16.msra.mxu0 %v2501_v62 }
 0x12c   :  { %920 = vmatprep.subr.bf16.mxu0 %v2507_v63 }
 0x12f   :  { %921 = vmatpush1.bf16.msra.mxu0 %v2513_v0 }
 0x130   :  { %1045 = vmatprep.subr.bf16.mxu0 %v2422_v49 }
 0x1e5   :  { %v753_v11 = vpop.f32.mrb[8].mxu0 }
 0x1e6   :  { %v755_v48 = vpop.f32.mrb[9].mxu0  ;;  %v754_v27 = vadd.f32 %v753_v11, %v628_v25 }
 0x1e7   :  { %v756_v3 = vadd.f32 %v755_v48, %v629_v47  ;;  %v757_v4 = vpop.f32.mrb[10].mxu0 }
 0x1e8   :  { %v759_v6 = vpop.f32.mrb[11].mxu0  ;;  %v758_v29 = vadd.f32 %v757_v4, %v631_v28  ;;  %v762_v32 = vmul.f32 0.5, %v754_v27 }
 0x1e9   :  { %v763_v7 = vmul.f32 0.5, %v756_v3  ;;  %v760_v8 = vadd.f32 %v759_v6, %v632_v5 }
 0x1ea   :  { %v764_v33 = vmul.f32 0.5, %v758_v29  ;;  %v895_v29 = vld [vmem:[#allocation2 + $0x80] sm:$0xff] }
 0x1eb   :  { %2156 = vtanh.f32 %v763_v7  ;;  %v765_v9 = vmul.f32 0.5, %v760_v8 }
 0x1ed   :  { %2158 = vtanh.f32 %v765_v9 }
 0x1ee   :  { %2160 = vtanh.f32 %v762_v32 }
 0x1ef   :  { %2162 = vtanh.f32 %v764_v33 }
 0x1f5   :  { %v2157_v10 = vpop.eup %2156 }
 0x1f6   :  { %v771_v12 = vmul.f32 0.5, %v2157_v10 }
 0x1f7   :  { %v2159_v13 = vpop.eup %2158 }
 0x1f8   :  { %v775_v15 = vadd.f32 0.5, %v771_v12  ;;  %v773_v16 = vmul.f32 0.5, %v2159_v13  ;;  %v2161_v3 = vpop.eup %2160 }
 0x1f9   :  { %v2163_v5 = vpop.eup %2162  ;;  %v770_v6 = vmul.f32 0.5, %v2161_v3 }
 0x1fa   :  { %v777_v19 = vadd.f32 0.5, %v773_v16  ;;  %v778_v20 = vmul.f32 %v775_v15, %v2561_v30  ;;  %v772_v11 = vmul.f32 0.5, %v2163_v5 }
 0x1fb   :  { %v774_v4 = vadd.f32 0.5, %v770_v6 }
 0x1fc   :  { %v779_v21 = vmul.f32 %v777_v19, %v2565_v34  ;;  %v776_v10 = vadd.f32 0.5, %v772_v11  ;;  %v891_v11 = vld [vmem:[#allocation2 + $0x60] sm:$0xff] }
 0x1fe   :  { %v780_v22 = vpack.c.bf16 %v779_v21, %v778_v20 }
 0x200   :  { %1961 = vmatmul.mubr.bf16.vlgmr.msra.gmra.mrb[4].mxu1 %v780_v22 }
 0x201   :  { %1965 = vmatpush3.bf16.msra.mxu1 %v2521_v1  ;;  %1980 = vmatprep.mubr.msk.bf16.mxu1 %vm2292_vm0, %v2290_v2 }
 0x202   :  { %1966 = vmatprep.subr.bf16.mxu1 %v2290_v2 }
 0x205   :  { %1967 = vmatpush3.bf16.msra.mxu1 %v2590_v31 }
 0x206   :  { %1968 = vmatprep.subr.bf16.mxu1 %v2290_v2 }
 0x209   :  { %1969 = vmatpush3.bf16.msra.mxu1 %v2597_v41 }
 0x20a   :  { %1970 = vmatprep.subr.bf16.mxu1 %v2290_v2 }
 0x20d   :  { %1971 = vmatpush3.bf16.msra.mxu1 %v2604_v42 }
 0x20e   :  { %1972 = vmatprep.subr.bf16.mxu1 %v2290_v2 }
 0x211   :  { %1973 = vmatpush3.bf16.msra.mxu1 %v2611_v43 }
 0x212   :  { %1974 = vmatprep.subr.bf16.mxu1 %v2290_v2 }
 0x215   :  { %1975 = vmatpush3.bf16.msra.mxu1 %v2618_v44 }
 0x216   :  { %1976 = vmatprep.subr.bf16.mxu1 %v2290_v2 }
 0x219   :  { %1977 = vmatpush3.bf16.msra.mxu1 %v2625_v45 }
 0x21a   :  { %1978 = vmatprep.subr.bf16.mxu1 %v2290_v2 }
 0x21d   :  { %1979 = vmatpush3.bf16.msra.mxu1 %v2632_v46 }
 0x21e   :  { %1984 = vmatprep.subr.bf16.mxu1 %v2290_v2 }
 0x2d3   :  { %v863_v35 = vpop.f32.mrb[4].mxu1 }
 0x2d4   :  { %v864_v36 = vadd.f32 %v863_v35, %v630_v26  ;;  %v1962_v37 = vpop.f32.mrb[5].mxu1 }
 0x2d5   :  { %v866_v40 = vpop.f32.mrb[6].mxu1 }
 0x2d6   :  { %2164 = vtanh.f32 %v864_v36  ;;  %v867_v47 = vadd.f32 %v866_v40, %v633_v39  ;;  %v1963_v48 = vpop.f32.mrb[7].mxu1 }
 0x2d8   :  { %2166 = vtanh.f32 %v867_v47 }
 0x2e0   :  { %v2165_v7 = vpop.eup %2164 }
 0x2e1   :  { %v872_v8 = vsub.f32 %v2165_v7, %v2561_v30 }
 0x2e2   :  { %v2167_v9 = vpop.eup %2166 }
 0x2e3   :  { %v874_v12 = vmul.f32 %v872_v8, %v774_v4  ;;  %v873_v13 = vsub.f32 %v2167_v9, %v2565_v34  ;;  %v894_v4 = vld [vmem:[#allocation2 + $0x78] sm:$0xff] }
 0x2e5   :  { %v878_v15 = vcombine.high %v874_v12, %v874_v12  ;;  %v875_v16 = vmul.f32 %v873_v13, %v776_v10  ;;  %v2664_v21 = vadd.f32 %v874_v12, %v2551_v17  ;;  %v893_v12 = vld [vmem:[#allocation2 + $0x70] sm:$0xff] }
 0x2e7   :  { %v879_v19 = vcombine.high %v875_v16, %v875_v16  ;;  %v2661_v20 = vadd.f32 %v878_v15, %v2547_v14  ;;  %v2667_v22 = vadd.f32 %v875_v16, %v2554_v23  ;;  %v892_v23 = vld [vmem:[#allocation2 + $0x68] sm:$0xff] }
 0x2e9   :  { %v2670_v25 = vadd.f32 %v879_v19, %v2557_v24  ;;  %v2674_v30 = vcombine.low %v2664_v21, %v2661_v20  ;;  %v896_v19 = vld [vmem:[#allocation2 + $0x88] sm:$0xff] }
 0x2eb   :  { %v2678_v34 = vcombine.low %v2667_v22, %v2670_v25 }
 0x2ed   :  { %v905_v14 = vpack.c.bf16 %v2678_v34, %v2674_v30 }
 0x2ef   :  { %939 = vmatmul.mubr.bf16.vlgmr.msra.gmra.mrb[12].mxu0 %v905_v14 }
 0x2f0   :  { %1046 = vmatpush1.bf16.msra.mxu0 %v2427_v50  ;;  %1077 = vmatprep.mubr.bf16.mxu0 %v2289_v18 }
 0x2f1   :  { %1047 = vmatprep.subr.bf16.mxu0 %v2436_v51 }
 0x2f4   :  { %1048 = vmatpush1.bf16.msra.mxu0 %v2441_v52 }
 0x2f5   :  { %1049 = vmatprep.subr.bf16.mxu0 %v2448_v53 }
 0x2f8   :  { %1050 = vmatpush1.bf16.msra.mxu0 %v2453_v54 }
 0x2f9   :  { %1051 = vmatprep.subr.bf16.mxu0 %v2460_v55 }
 0x2fc   :  { %1052 = vmatpush1.bf16.msra.mxu0 %v2465_v56 }
 0x2fd   :  { %1053 = vmatprep.subr.bf16.mxu0 %v2472_v57 }
 0x300   :  { %1054 = vmatpush1.bf16.msra.mxu0 %v2477_v58 }
 0x301   :  { %1055 = vmatprep.subr.bf16.mxu0 %v2484_v59 }
 0x304   :  { %1056 = vmatpush1.bf16.msra.mxu0 %v2489_v60 }
 0x305   :  { %1057 = vmatprep.subr.bf16.mxu0 %v2496_v61 }
 0x308   :  { %1058 = vmatpush1.bf16.msra.mxu0 %v2501_v62 }
 0x309   :  { %1059 = vmatprep.subr.bf16.mxu0 %v2507_v63 }
 0x30c   :  { %1060 = vmatpush1.bf16.msra.mxu0 %v2513_v0 }
 0x30d   :  { %1184 = vmatprep.subr.bf16.mxu0 %v2422_v49 }
 0x3c2   :  { %v940_v17 = vpop.f32.mrb[12].mxu0 }
 0x3c3   :  { %v942_v24 = vpop.f32.mrb[13].mxu0  ;;  %v941_v7 = vadd.f32 %v940_v17, %v891_v11 }
 0x3c4   :  { %v943_v27 = vadd.f32 %v942_v24, %v892_v23  ;;  %v944_v28 = vpop.f32.mrb[14].mxu0 }
 0x3c5   :  { %v946_v32 = vpop.f32.mrb[15].mxu0  ;;  %v945_v8 = vadd.f32 %v944_v28, %v894_v4  ;;  %v949_v9 = vmul.f32 0.5, %v941_v7 }
 0x3c6   :  { %v950_v33 = vmul.f32 0.5, %v943_v27  ;;  %v947_v26 = vadd.f32 %v946_v32, %v895_v29 }
 0x3c7   :  { %v951_v10 = vmul.f32 0.5, %v945_v8  ;;  %v1031_v8 = vld [vmem:[#allocation2 + $0x98] sm:$0xff] }
 0x3c8   :  { %2168 = vtanh.f32 %v950_v33  ;;  %v952_v35 = vmul.f32 0.5, %v947_v26 }
 0x3ca   :  { %2170 = vtanh.f32 %v952_v35 }
 0x3cb   :  { %2172 = vtanh.f32 %v949_v9 }
 0x3cc   :  { %2174 = vtanh.f32 %v951_v10 }
 0x3d2   :  { %v2169_v36 = vpop.eup %2168 }
 0x3d3   :  { %v958_v37 = vmul.f32 0.5, %v2169_v36 }
 0x3d4   :  { %v2171_v39 = vpop.eup %2170 }
 0x3d5   :  { %v962_v40 = vadd.f32 0.5, %v958_v37  ;;  %v960_v47 = vmul.f32 0.5, %v2171_v39  ;;  %v2173_v27 = vpop.eup %2172 }
 0x3d6   :  { %v2175_v29 = vpop.eup %2174  ;;  %v957_v32 = vmul.f32 0.5, %v2173_v27 }
 0x3d7   :  { %v964_v48 = vadd.f32 0.5, %v960_v47  ;;  %v965_v3 = vmul.f32 %v962_v40, %v2674_v30  ;;  %v959_v17 = vmul.f32 0.5, %v2175_v29 }
 0x3d8   :  { %v961_v28 = vadd.f32 0.5, %v957_v32 }
 0x3d9   :  { %v966_v5 = vmul.f32 %v964_v48, %v2678_v34  ;;  %v963_v36 = vadd.f32 0.5, %v959_v17 }
 0x3db   :  { %v967_v6 = vpack.c.bf16 %v966_v5, %v965_v3 }
 0x3dd   :  { %1981 = vmatmul.mubr.bf16.vlgmr.msra.gmra.mrb[8].mxu1 %v967_v6 }
 0x3de   :  { %1985 = vmatpush3.bf16.msra.mxu1 %v2521_v1  ;;  %2000 = vmatprep.mubr.msk.bf16.mxu1 %vm2292_vm0, %v2290_v2 }
 0x3df   :  { %1986 = vmatprep.subr.bf16.mxu1 %v2290_v2 }
 0x3e2   :  { %1987 = vmatpush3.bf16.msra.mxu1 %v2590_v31 }
 0x3e3   :  { %1988 = vmatprep.subr.bf16.mxu1 %v2290_v2 }
 0x3e6   :  { %1989 = vmatpush3.bf16.msra.mxu1 %v2597_v41 }
 0x3e7   :  { %1990 = vmatprep.subr.bf16.mxu1 %v2290_v2 }
 0x3ea   :  { %1991 = vmatpush3.bf16.msra.mxu1 %v2604_v42 }
 0x3eb   :  { %1992 = vmatprep.subr.bf16.mxu1 %v2290_v2 }
 0x3ee   :  { %1993 = vmatpush3.bf16.msra.mxu1 %v2611_v43 }
 0x3ef   :  { %1994 = vmatprep.subr.bf16.mxu1 %v2290_v2 }
 0x3f2   :  { %1995 = vmatpush3.bf16.msra.mxu1 %v2618_v44 }
 0x3f3   :  { %1996 = vmatprep.subr.bf16.mxu1 %v2290_v2 }
 0x3f6   :  { %1997 = vmatpush3.bf16.msra.mxu1 %v2625_v45 }
 0x3f7   :  { %1998 = vmatprep.subr.bf16.mxu1 %v2290_v2 }
 0x3fa   :  { %1999 = vmatpush3.bf16.msra.mxu1 %v2632_v46 }
 0x3fb   :  { %2004 = vmatprep.subr.bf16.mxu1 %v2290_v2 }
 0x4b0   :  { %v1002_v13 = vpop.f32.mrb[8].mxu1 }
 0x4b1   :  { %v1003_v15 = vadd.f32 %v1002_v13, %v893_v12  ;;  %v1982_v16 = vpop.f32.mrb[9].mxu1  ;;  %v1034_v13 = vld [vmem:[#allocation2 + $0xb0] sm:$0xff] }
 0x4b2   :  { %v1005_v14 = vpop.f32.mrb[10].mxu1 }
 0x4b3   :  { %2176 = vtanh.f32 %v1003_v15  ;;  %v1006_v23 = vadd.f32 %v1005_v14, %v896_v19  ;;  %v1983_v24 = vpop.f32.mrb[11].mxu1 }
 0x4b5   :  { %2178 = vtanh.f32 %v1006_v23 }
 0x4bd   :  { %v2177_v33 = vpop.eup %2176 }
 0x4be   :  { %v1011_v26 = vsub.f32 %v2177_v33, %v2674_v30 }
 0x4bf   :  { %v2179_v35 = vpop.eup %2178 }
 0x4c0   :  { %v1013_v37 = vmul.f32 %v1011_v26, %v961_v28  ;;  %v1012_v39 = vsub.f32 %v2179_v35, %v2678_v34  ;;  %v1030_v26 = vld [vmem:[#allocation2 + $0x90] sm:$0xff] }
 0x4c2   :  { %v1017_v40 = vcombine.high %v1013_v37, %v1013_v37  ;;  %v1014_v47 = vmul.f32 %v1012_v39, %v963_v36  ;;  %v2725_v5 = vadd.f32 %v1013_v37, %v2664_v21  ;;  %v1033_v36 = vld [vmem:[#allocation2 + $0xa8] sm:$0xff] }
 0x4c4   :  { %v1018_v48 = vcombine.high %v1014_v47, %v1014_v47  ;;  %v2722_v3 = vadd.f32 %v1017_v40, %v2661_v20  ;;  %v2728_v6 = vadd.f32 %v1014_v47, %v2667_v22  ;;  %v1032_v47 = vld [vmem:[#allocation2 + $0xa0] sm:$0xff] }
 0x4c6   :  { %v2731_v11 = vadd.f32 %v1018_v48, %v2670_v25  ;;  %v2735_v30 = vcombine.low %v2725_v5, %v2722_v3 }
 0x4c8   :  { %v2739_v34 = vcombine.low %v2728_v6, %v2731_v11 }
 0x4ca   :  { %v1044_v7 = vpack.c.bf16 %v2739_v34, %v2735_v30 }
 0x4cc   :  { %1078 = vmatmul.mubr.bf16.vlgmr.msra.gmra.mrb[16].mxu0 %v1044_v7 }
 0x4cd   :  { %1185 = vmatpush1.bf16.msra.mxu0 %v2427_v50  ;;  %1216 = vmatprep.mubr.bf16.mxu0 %v2289_v18 }
 0x4ce   :  { %1186 = vmatprep.subr.bf16.mxu0 %v2436_v51 }
 0x4d1   :  { %1187 = vmatpush1.bf16.msra.mxu0 %v2441_v52 }
 0x4d2   :  { %1188 = vmatprep.subr.bf16.mxu0 %v2448_v53 }
 0x4d5   :  { %1189 = vmatpush1.bf16.msra.mxu0 %v2453_v54 }
 0x4d6   :  { %1190 = vmatprep.subr.bf16.mxu0 %v2460_v55 }
 0x4d9   :  { %1191 = vmatpush1.bf16.msra.mxu0 %v2465_v56 }
 0x4da   :  { %1192 = vmatprep.subr.bf16.mxu0 %v2472_v57 }
 0x4dd   :  { %1193 = vmatpush1.bf16.msra.mxu0 %v2477_v58 }
 0x4de   :  { %1194 = vmatprep.subr.bf16.mxu0 %v2484_v59 }
 0x4e1   :  { %1195 = vmatpush1.bf16.msra.mxu0 %v2489_v60 }
 0x4e2   :  { %1196 = vmatprep.subr.bf16.mxu0 %v2496_v61 }
 0x4e5   :  { %1197 = vmatpush1.bf16.msra.mxu0 %v2501_v62 }
 0x4e6   :  { %1198 = vmatprep.subr.bf16.mxu0 %v2507_v63 }
 0x4e9   :  { %1199 = vmatpush1.bf16.msra.mxu0 %v2513_v0 }
 0x4ea   :  { %1323 = vmatprep.subr.bf16.mxu0 %v2422_v49 }
 0x59f   :  { %v1079_v4 = vpop.f32.mrb[16].mxu0 }
 0x5a0   :  { %v1081_v9 = vpop.f32.mrb[17].mxu0  ;;  %v1080_v35 = vadd.f32 %v1079_v4, %v1030_v26 }
 0x5a1   :  { %v1082_v10 = vadd.f32 %v1081_v9, %v1031_v8  ;;  %v1083_v12 = vpop.f32.mrb[18].mxu0  ;;  %v1035_v9 = vld [vmem:[#allocation2 + $0xb8] sm:$0xff] }
 0x5a2   :  { %v1085_v15 = vpop.f32.mrb[19].mxu0  ;;  %v1084_v37 = vadd.f32 %v1083_v12, %v1033_v36  ;;  %v1088_v39 = vmul.f32 0.5, %v1080_v35 }
 0x5a3   :  { %v1089_v16 = vmul.f32 0.5, %v1082_v10  ;;  %v1086_v19 = vadd.f32 %v1085_v15, %v1034_v13 }
 0x5a4   :  { %v1090_v40 = vmul.f32 0.5, %v1084_v37 }
 0x5a5   :  { %2180 = vtanh.f32 %v1089_v16  ;;  %v1091_v14 = vmul.f32 0.5, %v1086_v19 }
 0x5a7   :  { %2182 = vtanh.f32 %v1091_v14 }
 0x5a8   :  { %2184 = vtanh.f32 %v1088_v39 }
 0x5a9   :  { %2186 = vtanh.f32 %v1090_v40 }
 0x5af   :  { %v2181_v23 = vpop.eup %2180 }
 0x5b0   :  { %v1097_v24 = vmul.f32 0.5, %v2181_v23 }
 0x5b1   :  { %v2183_v27 = vpop.eup %2182 }
 0x5b2   :  { %v1101_v29 = vadd.f32 0.5, %v1097_v24  ;;  %v1099_v32 = vmul.f32 0.5, %v2183_v27  ;;  %v2185_v16 = vpop.eup %2184 }
 0x5b3   :  { %v2187_v19 = vpop.eup %2186  ;;  %v1096_v14 = vmul.f32 0.5, %v2185_v16 }
 0x5b4   :  { %v1103_v17 = vadd.f32 0.5, %v1099_v32  ;;  %v1104_v49 = vmul.f32 %v1101_v29, %v2735_v30  ;;  %v1098_v4 = vmul.f32 0.5, %v2187_v19  ;;  %v1171_v19 = vld [vmem:[#allocation2 + $0xd0] sm:$0xff] }
 0x5b5   :  { %v1100_v12 = vadd.f32 0.5, %v1096_v14 }
 0x5b6   :  { %v1105_v33 = vmul.f32 %v1103_v17, %v2739_v34  ;;  %v1102_v29 = vadd.f32 0.5, %v1098_v4 }
 0x5b8   :  { %v1106_v28 = vpack.c.bf16 %v1105_v33, %v1104_v49 }
 0x5ba   :  { %2001 = vmatmul.mubr.bf16.vlgmr.msra.gmra.mrb[12].mxu1 %v1106_v28 }
 0x5bb   :  { %2005 = vmatpush3.bf16.msra.mxu1 %v2521_v1  ;;  %2020 = vmatprep.mubr.msk.bf16.mxu1 %vm2292_vm0, %v2290_v2 }
 0x5bc   :  { %2006 = vmatprep.subr.bf16.mxu1 %v2290_v2 }
 0x5bf   :  { %2007 = vmatpush3.bf16.msra.mxu1 %v2590_v31 }
 0x5c0   :  { %2008 = vmatprep.subr.bf16.mxu1 %v2290_v2 }
 0x5c3   :  { %2009 = vmatpush3.bf16.msra.mxu1 %v2597_v41 }
 0x5c4   :  { %2010 = vmatprep.subr.bf16.mxu1 %v2290_v2 }
 0x5c7   :  { %2011 = vmatpush3.bf16.msra.mxu1 %v2604_v42 }
 0x5c8   :  { %2012 = vmatprep.subr.bf16.mxu1 %v2290_v2 }
 0x5cb   :  { %2013 = vmatpush3.bf16.msra.mxu1 %v2611_v43 }
 0x5cc   :  { %2014 = vmatprep.subr.bf16.mxu1 %v2290_v2 }
 0x5cf   :  { %2015 = vmatpush3.bf16.msra.mxu1 %v2618_v44 }
 0x5d0   :  { %2016 = vmatprep.subr.bf16.mxu1 %v2290_v2 }
 0x5d3   :  { %2017 = vmatpush3.bf16.msra.mxu1 %v2625_v45 }
 0x5d4   :  { %2018 = vmatprep.subr.bf16.mxu1 %v2290_v2 }
 0x5d7   :  { %2019 = vmatpush3.bf16.msra.mxu1 %v2632_v46 }
 0x5d8   :  { %2024 = vmatprep.subr.bf16.mxu1 %v2290_v2 }
 0x68d   :  { %v1141_v48 = vpop.f32.mrb[12].mxu1 }
 0x68e   :  { %v1142_v7 = vadd.f32 %v1141_v48, %v1032_v47  ;;  %v2002_v8 = vpop.f32.mrb[13].mxu1 }
 0x68f   :  { %v1144_v10 = vpop.f32.mrb[14].mxu1 }
 0x690   :  { %2188 = vtanh.f32 %v1142_v7  ;;  %v1145_v13 = vadd.f32 %v1144_v10, %v1035_v9  ;;  %v2003_v15 = vpop.f32.mrb[15].mxu1  ;;  %v1172_v10 = vld [vmem:[#allocation2 + $0xd8] sm:$0xff] }
 0x692   :  { %2190 = vtanh.f32 %v1145_v13 }
 0x69a   :  { %v2189_v23 = vpop.eup %2188 }
 0x69b   :  { %v1150_v24 = vsub.f32 %v2189_v23, %v2735_v30 }
 0x69c   :  { %v2191_v27 = vpop.eup %2190 }
 0x69d   :  { %v1152_v32 = vmul.f32 %v1150_v24, %v1100_v12  ;;  %v1151_v17 = vsub.f32 %v2191_v27, %v2739_v34  ;;  %v1174_v12 = vld [vmem:[#allocation2 + $0xe8] sm:$0xff] }
 0x69f   :  { %v1156_v49 = vcombine.high %v1152_v32, %v1152_v32  ;;  %v1153_v33 = vmul.f32 %v1151_v17, %v1102_v29  ;;  %v2786_v35 = vadd.f32 %v1152_v32, %v2725_v5 }
 0x6a1   :  { %v1157_v28 = vcombine.high %v1153_v33, %v1153_v33  ;;  %v2783_v26 = vadd.f32 %v1156_v49, %v2722_v3  ;;  %v2789_v36 = vadd.f32 %v1153_v33, %v2728_v6 }
 0x6a3   :  { %v2792_v37 = vadd.f32 %v1157_v28, %v2731_v11  ;;  %v2796_v30 = vcombine.low %v2786_v35, %v2783_v26 }
 0x6a5   :  { %v2800_v34 = vcombine.low %v2789_v36, %v2792_v37 }
 0x6a7   :  { %v1183_v39 = vpack.c.bf16 %v2800_v34, %v2796_v30 }
 0x6a9   :  { %1217 = vmatmul.mubr.bf16.vlgmr.msra.gmra.mrb[20].mxu0 %v1183_v39 }
 0x6aa   :  { %1324 = vmatpush1.bf16.msra.mxu0 %v2427_v50  ;;  %1355 = vmatprep.mubr.bf16.mxu0 %v2289_v18  ;;  %v2823_v50 = vld [vmem:[%s3136_s3 + $0x4] ss:$12 sps:$4 sm:$0xff]  }
 0x6ab   :  { %1325 = vmatprep.subr.bf16.mxu0 %v2436_v51 }
 0x6ae   :  { %1326 = vmatpush1.bf16.msra.mxu0 %v2441_v52  ;;  %v1170_v52 = vld [vmem:[#allocation2 + $0xc8] sm:$0xff] }
 0x6af   :  { %1327 = vmatprep.subr.bf16.mxu0 %v2448_v53 }
 0x6b2   :  { %1328 = vmatpush1.bf16.msra.mxu0 %v2453_v54 }
 0x6b3   :  { %1329 = vmatprep.subr.bf16.mxu0 %v2460_v55 }
 0x6b6   :  { %1330 = vmatpush1.bf16.msra.mxu0 %v2465_v56  ;;  %v1173_v56 = vld [vmem:[#allocation2 + $0xe0] sm:$0xff] }
 0x6b7   :  { %1331 = vmatprep.subr.bf16.mxu0 %v2472_v57 }
 0x6ba   :  { %1332 = vmatpush1.bf16.msra.mxu0 %v2477_v58 }
 0x6bb   :  { %1333 = vmatprep.subr.bf16.mxu0 %v2484_v59 }
 0x6be   :  { %1334 = vmatpush1.bf16.msra.mxu0 %v2489_v60 }
 0x6bf   :  { %1335 = vmatprep.subr.bf16.mxu0 %v2496_v61 }
 0x6c2   :  { %1336 = vmatpush1.bf16.msra.mxu0 %v2501_v62 }
 0x6c3   :  { %1337 = vmatprep.subr.bf16.mxu0 %v2507_v63 }
 0x6c6   :  { %1338 = vmatpush1.bf16.msra.mxu0 %v2513_v0 }
 0x6c7   :  { %1462 = vmatprep.subr.bf16.mxu0 %v2823_v50 }
 0x77c   :  { %v1218_v51 = vpop.f32.mrb[20].mxu0 }
 0x77d   :  { %v1220_v53 = vpop.f32.mrb[21].mxu0 }
 0x77e   :  { %v1221_v54 = vadd.f32 %v1220_v53, %v1170_v52  ;;  %v1222_v55 = vpop.f32.mrb[22].mxu0 }
 0x77f   :  { %v1224_v57 = vpop.f32.mrb[23].mxu0  ;;  %v1223_v13 = vadd.f32 %v1222_v55, %v1172_v10  ;;  %v2922_v10 = vld [vmem:[%s3136_s3 + $0x60] ss:$12 sps:$4 sm:$0xff]  }
 0x780   :  { %v1228_v58 = vmul.f32 0.5, %v1221_v54  ;;  %v1225_v59 = vadd.f32 %v1224_v57, %v1173_v56 }
 0x781   :  { %v1229_v16 = vmul.f32 0.5, %v1223_v13  ;;  %v2928_v13 = vld [vmem:[%s3136_s3 + $0x7c] ss:$12 sps:$4 sm:$0xff]  }
 0x782   :  { %2192 = vtanh.f32 %v1228_v58  ;;  %v1230_v60 = vmul.f32 0.5, %v1225_v59 }
 0x784   :  { %2194 = vtanh.f32 %v1230_v60 }
 0x78c   :  { %v2193_v61 = vpop.eup %2192 }
 0x78d   :  { %v1236_v62 = vmul.f32 0.5, %v2193_v61 }
 0x78e   :  { %v2195_v63 = vpop.eup %2194 }
 0x78f   :  { %v1240_v0 = vadd.f32 0.5, %v1236_v62  ;;  %v1238_v40 = vmul.f32 0.5, %v2195_v63 }
 0x791   :  { %v1242_v47 = vadd.f32 0.5, %v1238_v40  ;;  %v1243_v48 = vmul.f32 %v1240_v0, %v2796_v30  ;;  %v2873_v0 = vld [vmem:[%s3136_s3] ss:$12 sps:$4 sm:$0xff]   ;;  %v2880_v40 = vld [vmem:[%s3136_s3 + $0x1c] ss:$12 sps:$4 sm:$0xff]  }
 0x793   :  { %v1244_v7 = vmul.f32 %v1242_v47, %v2800_v34  ;;  %v2886_v47 = vld [vmem:[%s3136_s3 + $0x18] ss:$12 sps:$4 sm:$0xff]  }
 0x795   :  { %v1245_v8 = vpack.c.bf16 %v1244_v7, %v1243_v48  ;;  %v2892_v48 = vld [vmem:[%s3136_s3 + $0x34] ss:$12 sps:$4 sm:$0xff]   ;;  %v2898_v7 = vld [vmem:[%s3136_s3 + $0x30] ss:$12 sps:$4 sm:$0xff]  }
 0x797   :  { %2021 = vmatmul.mubr.bf16.vlgmr.msra.gmra.mrb[16].mxu1 %v1245_v8  ;;  %v2904_v8 = vld [vmem:[%s3136_s3 + $0x4c] ss:$12 sps:$4 sm:$0xff]  }
 0x798   :  { %2025 = vmatpush3.bf16.msra.mxu1 %v2521_v1  ;;  %2040 = vmatprep.mubr.msk.bf16.mxu1 %vm2292_vm0, %v2290_v2  ;;  %v1169_v1 = vld [vmem:[#allocation2 + $0xc0] sm:$0xff] }
 0x799   :  { %2026 = vmatprep.subr.bf16.mxu1 %v2290_v2  ;;  %v1219_v9 = vadd.f32 %v1218_v51, %v1169_v1  ;;  %v2910_v1 = vld [vmem:[%s3136_s3 + $0x48] ss:$12 sps:$4 sm:$0xff]  }
 0x79b   :  { %v1227_v15 = vmul.f32 0.5, %v1219_v9  ;;  %v2916_v9 = vld [vmem:[%s3136_s3 + $0x64] ss:$12 sps:$4 sm:$0xff]  }
 0x79c   :  { %2027 = vmatpush3.bf16.msra.mxu1 %v2590_v31 }
 0x79d   :  { %2028 = vmatprep.subr.bf16.mxu1 %v2290_v2  ;;  %2196 = vtanh.f32 %v1227_v15  ;;  %v2934_v15 = vld [vmem:[%s3136_s3 + $0x78] ss:$12 sps:$4 sm:$0xff]  }
 0x79e   :  { %2198 = vtanh.f32 %v1229_v16  ;;  %v2940_v16 = vld [vmem:[%s3136_s3 + $0x94] ss:$12 sps:$4 sm:$0xff]  }
 0x7a0   :  { %2029 = vmatpush3.bf16.msra.mxu1 %v2597_v41 }
 0x7a1   :  { %2030 = vmatprep.subr.bf16.mxu1 %v2290_v2 }
 0x7a4   :  { %2031 = vmatpush3.bf16.msra.mxu1 %v2604_v42 }
 0x7a5   :  { %2032 = vmatprep.subr.bf16.mxu1 %v2290_v2 }
 0x7a7   :  { %v2197_v32 = vpop.eup %2196 }
 0x7a8   :  { %2033 = vmatpush3.bf16.msra.mxu1 %v2611_v43  ;;  %v2199_v17 = vpop.eup %2198  ;;  %v1235_v49 = vmul.f32 0.5, %v2197_v32  ;;  %v1312_v32 = vld [vmem:[#allocation2 + $0x110] sm:$0xff] }
 0x7a9   :  { %2034 = vmatprep.subr.bf16.mxu1 %v2290_v2  ;;  %v1237_v33 = vmul.f32 0.5, %v2199_v17 }
 0x7aa   :  { %v1239_v39 = vadd.f32 0.5, %v1235_v49 }
 0x7ab   :  { %v1241_v53 = vadd.f32 0.5, %v1237_v33 }
 0x7ac   :  { %2035 = vmatpush3.bf16.msra.mxu1 %v2618_v44 }
 0x7ad   :  { %2036 = vmatprep.subr.bf16.mxu1 %v2290_v2 }
 0x7b0   :  { %2037 = vmatpush3.bf16.msra.mxu1 %v2625_v45 }
 0x7b1   :  { %2038 = vmatprep.subr.bf16.mxu1 %v2290_v2 }
 0x7b4   :  { %2039 = vmatpush3.bf16.msra.mxu1 %v2632_v46 }
 0x7b5   :  { %2044 = vmatprep.subr.bf16.mxu1 %v2290_v2 }
 0x86a   :  { %v1280_v14 = vpop.f32.mrb[16].mxu1 }
 0x86b   :  { %v1281_v4 = vadd.f32 %v1280_v14, %v1171_v19  ;;  %v2022_v23 = vpop.f32.mrb[17].mxu1  ;;  %v2946_v19 = vld [vmem:[%s3136_s3 + $0x90] ss:$12 sps:$4 sm:$0xff]   ;;  %v2952_v14 = vld [vmem:[%s3136_s3 + $0xac] ss:$12 sps:$4 sm:$0xff]  }
 0x86c   :  { %v1283_v24 = vpop.f32.mrb[18].mxu1 }
 0x86d   :  { %2200 = vtanh.f32 %v1281_v4  ;;  %v1284_v27 = vadd.f32 %v1283_v24, %v1174_v12  ;;  %v2023_v29 = vpop.f32.mrb[19].mxu1  ;;  %v2958_v4 = vld [vmem:[%s3136_s3 + $0xa8] ss:$12 sps:$4 sm:$0xff]   ;;  %v1309_v12 = vld [vmem:[#allocation2 + $0xf8] sm:$0xff] }
 0x86f   :  { %2202 = vtanh.f32 %v1284_v27 }
 0x877   :  { %v2201_v28 = vpop.eup %2200 }
 0x878   :  { %v1289_v51 = vsub.f32 %v2201_v28, %v2796_v30 }
 0x879   :  { %v2203_v52 = vpop.eup %2202 }
 0x87a   :  { %v1291_v54 = vmul.f32 %v1289_v51, %v1239_v39  ;;  %v1290_v55 = vsub.f32 %v2203_v52, %v2800_v34 }
 0x87c   :  { %v1295_v56 = vcombine.high %v1291_v54, %v1291_v54  ;;  %v1292_v57 = vmul.f32 %v1290_v55, %v1241_v53  ;;  %v2852_v60 = vadd.f32 %v1291_v54, %v2786_v35 }
 0x87e   :  { %v1296_v58 = vcombine.high %v1292_v57, %v1292_v57  ;;  %v2849_v59 = vadd.f32 %v1295_v56, %v2783_v26  ;;  %v2855_v61 = vadd.f32 %v1292_v57, %v2789_v36 }
 0x880   :  { %v2858_v62 = vadd.f32 %v1296_v58, %v2792_v37  ;;  %v2862_v30 = vcombine.low %v2852_v60, %v2849_v59  ;;  %v2967_v58 = vld [vmem:[%s3136_s3 + $0x8] ss:$12 sps:$4 sm:$0xff]  }
 0x882   :  { %v2866_v34 = vcombine.low %v2855_v61, %v2858_v62 }
 0x884   :  { %v1322_v63 = vpack.c.bf16 %v2866_v34, %v2862_v30 }
 0x886   :  { %1356 = vmatmul.mubr.bf16.vlgmr.msra.gmra.mrb[24].mxu0 %v1322_v63 }
 0x887   :  { %1463 = vmatpush1.bf16.msra.mxu0 %v2873_v0  ;;  %1494 = vmatprep.mubr.bf16.mxu0 %v2289_v18 }
 0x888   :  { %1464 = vmatprep.subr.bf16.mxu0 %v2880_v40 }
 0x88b   :  { %1465 = vmatpush1.bf16.msra.mxu0 %v2886_v47 }
 0x88c   :  { %1466 = vmatprep.subr.bf16.mxu0 %v2892_v48 }
 0x88f   :  { %1467 = vmatpush1.bf16.msra.mxu0 %v2898_v7 }
 0x890   :  { %1468 = vmatprep.subr.bf16.mxu0 %v2904_v8 }
 0x893   :  { %1469 = vmatpush1.bf16.msra.mxu0 %v2910_v1 }
 0x894   :  { %1470 = vmatprep.subr.bf16.mxu0 %v2916_v9 }
 0x897   :  { %1471 = vmatpush1.bf16.msra.mxu0 %v2922_v10 }
 0x898   :  { %1472 = vmatprep.subr.bf16.mxu0 %v2928_v13 }
 0x89b   :  { %1473 = vmatpush1.bf16.msra.mxu0 %v2934_v15 }
 0x89c   :  { %1474 = vmatprep.subr.bf16.mxu0 %v2940_v16 }
 0x89f   :  { %1475 = vmatpush1.bf16.msra.mxu0 %v2946_v19 }
 0x8a0   :  { %1476 = vmatprep.subr.bf16.mxu0 %v2952_v14 }
 0x8a3   :  { %1477 = vmatpush1.bf16.msra.mxu0 %v2958_v4 }
 0x8a4   :  { %1601 = vmatprep.subr.bf16.mxu0 %v2823_v50 }
 0x959   :  { %v1357_v23 = vpop.f32.mrb[24].mxu0 }
 0x95a   :  { %v1359_v24 = vpop.f32.mrb[25].mxu0 }
 0x95b   :  { %v1360_v27 = vadd.f32 %v1359_v24, %v1309_v12  ;;  %v1361_v29 = vpop.f32.mrb[26].mxu0  ;;  %v1310_v24 = vld [vmem:[#allocation2 + $0x100] sm:$0xff] }
 0x95c   :  { %v1363_v17 = vpop.f32.mrb[27].mxu0 }
 0x95d   :  { %v1367_v49 = vmul.f32 0.5, %v1360_v27  ;;  %v1364_v33 = vadd.f32 %v1363_v17, %v1312_v32  ;;  %v1313_v17 = vld [vmem:[#allocation2 + $0x118] sm:$0xff] }
 0x95f   :  { %2204 = vtanh.f32 %v1367_v49  ;;  %v1369_v28 = vmul.f32 0.5, %v1364_v33 }
 0x961   :  { %2206 = vtanh.f32 %v1369_v28 }
 0x969   :  { %v2205_v39 = vpop.eup %2204 }
 0x96a   :  { %v1375_v51 = vmul.f32 0.5, %v2205_v39 }
 0x96b   :  { %v2207_v52 = vpop.eup %2206 }
 0x96c   :  { %v1379_v53 = vadd.f32 0.5, %v1375_v51  ;;  %v1377_v54 = vmul.f32 0.5, %v2207_v52 }
 0x96e   :  { %v1381_v55 = vadd.f32 0.5, %v1377_v54  ;;  %v1382_v50 = vmul.f32 %v1379_v53, %v2862_v30 }
 0x970   :  { %v1383_v56 = vmul.f32 %v1381_v55, %v2866_v34 }
 0x972   :  { %v1384_v57 = vpack.c.bf16 %v1383_v56, %v1382_v50 }
 0x974   :  { %2041 = vmatmul.mubr.bf16.vlgmr.msra.gmra.mrb[20].mxu1 %v1384_v57 }
 0x975   :  { %2045 = vmatpush3.bf16.msra.mxu1 %v2967_v58  ;;  %2060 = vmatprep.mubr.msk.bf16.mxu1 %vm2292_vm0, %v2290_v2 }
 0x976   :  { %2046 = vmatprep.subr.bf16.mxu1 %v2290_v2 }
 0x979   :  { %2047 = vmatpush3.bf16.msra.mxu1 %v2590_v31  ;;  %v1308_v31 = vld [vmem:[#allocation2 + $0xf0] sm:$0xff] }
 0x97a   :  { %2048 = vmatprep.subr.bf16.mxu1 %v2290_v2 }
 0x97d   :  { %2049 = vmatpush3.bf16.msra.mxu1 %v2597_v41  ;;  %v1358_v41 = vadd.f32 %v1357_v23, %v1308_v31 }
 0x97e   :  { %2050 = vmatprep.subr.bf16.mxu1 %v2290_v2 }
 0x97f   :  { %v1366_v12 = vmul.f32 0.5, %v1358_v41 }
 0x981   :  { %2051 = vmatpush3.bf16.msra.mxu1 %v2604_v42  ;;  %v1311_v42 = vld [vmem:[#allocation2 + $0x108] sm:$0xff]  ;;  %2208 = vtanh.f32 %v1366_v12 }
 0x982   :  { %2052 = vmatprep.subr.bf16.mxu1 %v2290_v2  ;;  %v1362_v63 = vadd.f32 %v1361_v29, %v1311_v42 }
 0x985   :  { %2053 = vmatpush3.bf16.msra.mxu1 %v2611_v43  ;;  %v1368_v43 = vmul.f32 0.5, %v1362_v63 }
 0x986   :  { %2054 = vmatprep.subr.bf16.mxu1 %v2290_v2 }
 0x987   :  { %2210 = vtanh.f32 %v1368_v43 }
 0x989   :  { %2055 = vmatpush3.bf16.msra.mxu1 %v2618_v44 }
 0x98a   :  { %2056 = vmatprep.subr.bf16.mxu1 %v2290_v2 }
 0x98d   :  { %2057 = vmatpush3.bf16.msra.mxu1 %v2625_v45 }
 0x98e   :  { %2058 = vmatprep.subr.bf16.mxu1 %v2290_v2 }
 0x991   :  { %2059 = vmatpush3.bf16.msra.mxu1 %v2632_v46  ;;  %v2209_v46 = vpop.eup %2208 }
 0x992   :  { %2064 = vmatprep.subr.bf16.mxu1 %v2290_v2  ;;  %v2211_v28 = vpop.eup %2210  ;;  %v1374_v39 = vmul.f32 0.5, %v2209_v46  ;;  %v2263_v46 = vld [vmem:[%s3136_s3 + $0xb0] ss:$12 sps:$4 sm:$0xff]  }
 0x993   :  { %v1376_v23 = vmul.f32 0.5, %v2211_v28  ;;  %v1447_v28 = vld [vmem:[#allocation2 + $0x120] sm:$0xff] }
 0x994   :  { %v1378_v29 = vadd.f32 0.5, %v1374_v39 }
 0x995   :  { %v1380_v54 = vadd.f32 0.5, %v1376_v23  ;;  %v1450_v23 = vld [vmem:[#allocation2 + $0x138] sm:$0xff] }
 0xa47   :  { %v1419_v44 = vpop.f32.mrb[20].mxu1 }
 0xa48   :  { %v1420_v27 = vadd.f32 %v1419_v44, %v1310_v24  ;;  %v2042_v32 = vpop.f32.mrb[21].mxu1 }
 0xa49   :  { %v1422_v45 = vpop.f32.mrb[22].mxu1  ;;  %v2257_v32 = vld [vmem:[%s3136_s3 + $0x20] ss:$12 sps:$4 sm:$0xff]  }
 0xa4a   :  { %2212 = vtanh.f32 %v1420_v27  ;;  %v1423_v49 = vadd.f32 %v1422_v45, %v1313_v17  ;;  %v2043_v33 = vpop.f32.mrb[23].mxu1  ;;  %v2258_v17 = vld [vmem:[%s3136_s3 + $0x38] ss:$12 sps:$4 sm:$0xff]   ;;  %v2260_v45 = vld [vmem:[%s3136_s3 + $0x68] ss:$12 sps:$4 sm:$0xff]  }
 0xa4b   :  { %v2262_v33 = vld [vmem:[%s3136_s3 + $0x98] ss:$12 sps:$4 sm:$0xff]  }
 0xa4c   :  { %2214 = vtanh.f32 %v1423_v49  ;;  %v2261_v49 = vld [vmem:[%s3136_s3 + $0x80] ss:$12 sps:$4 sm:$0xff]  }
 0xa54   :  { %v2213_v51 = vpop.eup %2212 }
 0xa55   :  { %v1428_v52 = vsub.f32 %v2213_v51, %v2862_v30 }
 0xa56   :  { %v2215_v53 = vpop.eup %2214 }
 0xa57   :  { %v1430_v55 = vmul.f32 %v1428_v52, %v1378_v29  ;;  %v1429_v50 = vsub.f32 %v2215_v53, %v2866_v34  ;;  %v1449_v53 = vld [vmem:[#allocation2 + $0x130] sm:$0xff] }
 0xa59   :  { %v1434_v56 = vcombine.high %v1430_v55, %v1430_v55  ;;  %v1431_v57 = vmul.f32 %v1429_v50, %v1380_v54  ;;  %v2993_v42 = vadd.f32 %v1430_v55, %v2852_v60 }
 0xa5b   :  { %v1435_v31 = vcombine.high %v1431_v57, %v1431_v57  ;;  %v2990_v41 = vadd.f32 %v1434_v56, %v2849_v59  ;;  %v2996_v63 = vadd.f32 %v1431_v57, %v2855_v61  ;;  %v1452_v56 = vld [vmem:[#allocation2 + $0x148] sm:$0xff] }
 0xa5d   :  { %v2999_v12 = vadd.f32 %v1435_v31, %v2858_v62  ;;  %v3003_v30 = vcombine.low %v2993_v42, %v2990_v41 }
 0xa5f   :  { %v3007_v34 = vcombine.low %v2996_v63, %v2999_v12 }
 0xa61   :  { %v1461_v43 = vpack.c.bf16 %v3007_v34, %v3003_v30 }
 0xa63   :  { %1495 = vmatmul.mubr.bf16.vlgmr.msra.gmra.mrb[28].mxu0 %v1461_v43 }
 0xa64   :  { %1602 = vmatpush1.bf16.msra.mxu0 %v2873_v0  ;;  %1633 = vmatprep.mubr.bf16.mxu0 %v2289_v18  ;;  %v1448_v0 = vld [vmem:[#allocation2 + $0x128] sm:$0xff] }
 0xa65   :  { %1603 = vmatprep.subr.bf16.mxu0 %v2880_v40 }
 0xa68   :  { %1604 = vmatpush1.bf16.msra.mxu0 %v2886_v47 }
 0xa69   :  { %1605 = vmatprep.subr.bf16.mxu0 %v2892_v48 }
 0xa6c   :  { %1606 = vmatpush1.bf16.msra.mxu0 %v2898_v7  ;;  %v1451_v7 = vld [vmem:[#allocation2 + $0x140] sm:$0xff] }
 0xa6d   :  { %1607 = vmatprep.subr.bf16.mxu0 %v2904_v8 }
 0xa70   :  { %1608 = vmatpush1.bf16.msra.mxu0 %v2910_v1 }
 0xa71   :  { %1609 = vmatprep.subr.bf16.mxu0 %v2916_v9 }
 0xa74   :  { %1610 = vmatpush1.bf16.msra.mxu0 %v2922_v10 }
 0xa75   :  { %1611 = vmatprep.subr.bf16.mxu0 %v2928_v13 }
 0xa78   :  { %1612 = vmatpush1.bf16.msra.mxu0 %v2934_v15 }
 0xa79   :  { %1613 = vmatprep.subr.bf16.mxu0 %v2940_v16 }
 0xa7c   :  { %1614 = vmatpush1.bf16.msra.mxu0 %v2946_v19 }
 0xa7d   :  { %1615 = vmatprep.subr.bf16.mxu0 %v2952_v14 }
 0xa80   :  { %1616 = vmatpush1.bf16.msra.mxu0 %v2958_v4 }
 0xb36   :  { %v1496_v18 = vpop.f32.mrb[28].mxu0 }
 0xb37   :  { %v1498_v40 = vpop.f32.mrb[29].mxu0  ;;  %v1497_v39 = vadd.f32 %v1496_v18, %v1447_v28 }
 0xb38   :  { %v1499_v47 = vadd.f32 %v1498_v40, %v1448_v0  ;;  %v1500_v48 = vpop.f32.mrb[30].mxu0 }
 0xb39   :  { %v1502_v8 = vpop.f32.mrb[31].mxu0  ;;  %v1501_v51 = vadd.f32 %v1500_v48, %v1450_v23  ;;  %v1505_v29 = vmul.f32 0.5, %v1497_v39 }
 0xb3a   :  { %v1506_v1 = vmul.f32 0.5, %v1499_v47  ;;  %v1503_v9 = vadd.f32 %v1502_v8, %v1451_v7 }
 0xb3b   :  { %v1507_v52 = vmul.f32 0.5, %v1501_v51 }
 0xb3c   :  { %2216 = vtanh.f32 %v1506_v1  ;;  %v1508_v10 = vmul.f32 0.5, %v1503_v9 }
 0xb3e   :  { %2218 = vtanh.f32 %v1508_v10 }
 0xb3f   :  { %2220 = vtanh.f32 %v1505_v29 }
 0xb40   :  { %2222 = vtanh.f32 %v1507_v52 }
 0xb46   :  { %v2217_v13 = vpop.eup %2216 }
 0xb47   :  { %v1514_v15 = vmul.f32 0.5, %v2217_v13 }
 0xb48   :  { %v2219_v16 = vpop.eup %2218 }
 0xb49   :  { %v1518_v19 = vadd.f32 0.5, %v1514_v15  ;;  %v1516_v24 = vmul.f32 0.5, %v2219_v16  ;;  %v2221_v43 = vpop.eup %2220 }
 0xb4a   :  { %v2223_v0 = vpop.eup %2222  ;;  %v1513_v40 = vmul.f32 0.5, %v2221_v43 }
 0xb4b   :  { %v1520_v14 = vadd.f32 0.5, %v1516_v24  ;;  %v1521_v4 = vmul.f32 %v1518_v19, %v3003_v30  ;;  %v1515_v18 = vmul.f32 0.5, %v2223_v0 }
 0xb4c   :  { %v1517_v48 = vadd.f32 0.5, %v1513_v40 }
 0xb4d   :  { %v1522_v44 = vmul.f32 %v1520_v14, %v3007_v34  ;;  %v1519_v1 = vadd.f32 0.5, %v1515_v18  ;;  %v1588_v18 = vld [vmem:[#allocation2 + $0x160] sm:$0xff] }
 0xb4f   :  { %v1523_v27 = vpack.c.bf16 %v1522_v44, %v1521_v4 }
 0xb51   :  { %2061 = vmatmul.mubr.bf16.vlgmr.msra.gmra.mrb[24].mxu1 %v1523_v27 }
 0xb52   :  { %2065 = vmatpush3.bf16.msra.mxu1 %v2967_v58  ;;  %2080 = vmatprep.mubr.msk.bf16.mxu1 %vm2292_vm0, %v2290_v2  ;;  %v2259_v58 = vld [vmem:[%s3136_s3 + $0x50] ss:$12 sps:$4 sm:$0xff]   ;;  %s2293_s3 = smov [#allocation3]  }
 0xb53   :  { %2066 = vmatprep.subr.bf16.mxu1 %v2290_v2  ;;  %s1773_s11 = sshll.u32 %s2293_s3, 4  ;;  %s1774_s11 = int_to_ptr.vmem [resolvable:$true] %s1773_s11 }
 0xb54   :  { %s2264_s12 = scalar_lea.vmem %s1774_s11, 64  ;;  %p2269_p1 = scmp.lt.s32.totalorder %s1774_s11, %s1774_s11 }
 0xb55   :  { %p2265_p0 = scmp.ne.s32.totalorder %s1774_s11, %s2264_s12  ;;  %p2270_p2 = scmp.lt.s32.totalorder %s2264_s12, %s2264_s12 }
 0xb56   :  { %2067 = vmatpush3.bf16.msra.mxu1 %v2257_v32  ;;  %v1587_v32 = vld [vmem:[#allocation2 + $0x158] sm:$0xff] }
 0xb57   :  { %2068 = vmatprep.subr.bf16.mxu1 %v2290_v2  ;;  %p2271_p3 = por %p2270_p2, %p2269_p1 }
 0xb59   :  { %p2272_p4 = pnand %p2271_p3, %p2265_p0 }
 0xb5a   :  { %2069 = vmatpush3.bf16.msra.mxu1 %v2258_v17 }
 0xb5b   :  { %2070 = vmatprep.subr.bf16.mxu1 %v2290_v2 }
 0xb5e   :  { %2071 = vmatpush3.bf16.msra.mxu1 %v2259_v58 }
 0xb5f   :  { %2072 = vmatprep.subr.bf16.mxu1 %v2290_v2 }
 0xb62   :  { %2073 = vmatpush3.bf16.msra.mxu1 %v2260_v45 }
 0xb63   :  { %2074 = vmatprep.subr.bf16.mxu1 %v2290_v2 }
 0xb66   :  { %2075 = vmatpush3.bf16.msra.mxu1 %v2261_v49  ;;  %v1590_v49 = vld [vmem:[#allocation2 + $0x170] sm:$0xff] }
 0xb67   :  { %2076 = vmatprep.subr.bf16.mxu1 %v2290_v2 }
 0xb6a   :  { %2077 = vmatpush3.bf16.msra.mxu1 %v2262_v33 }
 0xb6b   :  { %2078 = vmatprep.subr.bf16.mxu1 %v2290_v2 }
 0xb6e   :  { %2079 = vmatpush3.bf16.msra.mxu1 %v2263_v46 }
 0xc24   :  { %v1558_v54 = vpop.f32.mrb[24].mxu1 }
 0xc25   :  { %v1559_v55 = vadd.f32 %v1558_v54, %v1449_v53  ;;  %v2062_v50 = vpop.f32.mrb[25].mxu1 }
 0xc26   :  { %v1561_v57 = vpop.f32.mrb[26].mxu1 }
 0xc27   :  { %2224 = vtanh.f32 %v1559_v55  ;;  %v1562_v2 = vadd.f32 %v1561_v57, %v1452_v56  ;;  %v2063_v31 = vpop.f32.mrb[27].mxu1  ;;  %v1586_v57 = vld [vmem:[#allocation2 + $0x150] sm:$0xff] }
 0xc28   :  { %v1589_v31 = vld [vmem:[#allocation2 + $0x168] sm:$0xff] }
 0xc29   :  { %2226 = vtanh.f32 %v1562_v2 }
 0xc31   :  { %v2225_v47 = vpop.eup %2224 }
 0xc32   :  { %v1567_v7 = vsub.f32 %v2225_v47, %v3003_v30 }
 0xc33   :  { %v2227_v8 = vpop.eup %2226 }
 0xc34   :  { %v1569_v9 = vmul.f32 %v1567_v7, %v1517_v48  ;;  %v1568_v10 = vsub.f32 %v2227_v8, %v3007_v34  ;;  %v1591_v8 = vld [vmem:[#allocation2 + $0x178] sm:$0xff] }
 0xc36   :  { %v1573_v13 = vcombine.high %v1569_v9, %v1569_v9  ;;  %v1570_v15 = vmul.f32 %v1568_v10, %v1519_v1  ;;  %v3066_v24 = vadd.f32 %v1569_v9, %v2993_v42 }
 0xc38   :  { %v1574_v16 = vcombine.high %v1570_v15, %v1570_v15  ;;  %v3063_v19 = vadd.f32 %v1573_v13, %v2990_v41  ;;  %v3069_v14 = vadd.f32 %v1570_v15, %v2996_v63 }
 0xc3a   :  { %v3072_v4 = vadd.f32 %v1574_v16, %v2999_v12  ;;  %v3076_v30 = vcombine.low %v3066_v24, %v3063_v19  ;;  %v1025_v16 = vadd.f32 %v2725_v5, %v2664_v21 }
 0xc3c   :  { %v3080_v34 = vcombine.low %v3069_v14, %v3072_v4 }
 0xc3e   :  { %v1600_v44 = vpack.c.bf16 %v3080_v34, %v3076_v30 }
 0xc40   :  { %1634 = vmatmul.mubr.bf16.vlgmr.msra.gmra.mrb[32].mxu0 %v1600_v44 }
 0xd13   :  { %v1635_v27 = vpop.f32.mrb[32].mxu0 }
 0xd14   :  { %v1637_v17 = vpop.f32.mrb[33].mxu0  ;;  %v1636_v2 = vadd.f32 %v1635_v27, %v1586_v57  ;;  %v1027_v27 = vadd.f32 %v2728_v6, %v2667_v22 }
 0xd15   :  { %v1638_v58 = vadd.f32 %v1637_v17, %v1587_v32  ;;  %v1639_v45 = vpop.f32.mrb[34].mxu0  ;;  %v1026_v32 = vadd.f32 %v2722_v3, %v2661_v20  ;;  %v1164_v17 = vadd.f32 %v2786_v35, %v1025_v16 }
 0xd16   :  { %v1641_v33 = vpop.f32.mrb[35].mxu0  ;;  %v1640_v43 = vadd.f32 %v1639_v45, %v1589_v31  ;;  %v1644_v0 = vmul.f32 0.5, %v1636_v2 }
 0xd17   :  { %v1645_v46 = vmul.f32 0.5, %v1638_v58  ;;  %v1642_v28 = vadd.f32 %v1641_v33, %v1590_v49  ;;  %v1028_v49 = vadd.f32 %v2731_v11, %v2670_v25  ;;  %v1166_v33 = vadd.f32 %v2789_v36, %v1027_v27 }
 0xd18   :  { %v1646_v40 = vmul.f32 0.5, %v1640_v43  ;;  %v1303_v21 = vadd.f32 %v2852_v60, %v1164_v17 }
 0xd19   :  { %2228 = vtanh.f32 %v1645_v46  ;;  %v1647_v39 = vmul.f32 0.5, %v1642_v28  ;;  %v1165_v46 = vadd.f32 %v2783_v26, %v1026_v32  ;;  %v1167_v6 = vadd.f32 %v2792_v37, %v1028_v49 }
 0xd1a   :  { %v1305_v20 = vadd.f32 %v2855_v61, %v1166_v33  ;;  %v1442_v35 = vadd.f32 %v2993_v42, %v1303_v21 }
 0xd1b   :  { %2230 = vtanh.f32 %v1647_v39  ;;  %v1304_v3 = vadd.f32 %v2849_v59, %v1165_v46  ;;  %v1306_v26 = vadd.f32 %v2858_v62, %v1167_v6 }
 0xd1c   :  { %2232 = vtanh.f32 %v1644_v0  ;;  %v1444_v36 = vadd.f32 %v2996_v63, %v1305_v20 }
 0xd1d   :  { %2234 = vtanh.f32 %v1646_v40  ;;  %v1443_v60 = vadd.f32 %v2990_v41, %v1304_v3  ;;  %v1445_v42 = vadd.f32 %v2999_v12, %v1306_v26 }
 0xd1f   :  { %v1582_v59 = vadd.f32 %v3063_v19, %v1443_v60  ;;  %v1584_v41 = vadd.f32 %v3072_v4, %v1445_v42 }
 0xd23   :  { %v2229_v23 = vpop.eup %2228 }
 0xd24   :  { %v1653_v51 = vmul.f32 0.5, %v2229_v23 }
 0xd25   :  { %v2231_v29 = vpop.eup %2230 }
 0xd26   :  { %v1657_v52 = vadd.f32 0.5, %v1653_v51  ;;  %v1655_v53 = vmul.f32 0.5, %v2231_v29  ;;  %v2233_v13 = vpop.eup %2232  ;;  %v1583_v51 = vadd.f32 %v3069_v14, %v1444_v36 }
 0xd27   :  { %v2235_v15 = vpop.eup %2234  ;;  %v1652_v44 = vmul.f32 0.5, %v2233_v13 }
 0xd28   :  { %v1659_v54 = vadd.f32 0.5, %v1655_v53  ;;  %v1660_v55 = vmul.f32 %v1657_v52, %v3076_v30  ;;  %v1654_v58 = vmul.f32 0.5, %v2235_v15 }
 0xd29   :  { %v1656_v5 = vadd.f32 0.5, %v1652_v44 }
 0xd2a   :  { %v1661_v50 = vmul.f32 %v1659_v54, %v3080_v34  ;;  %v1658_v39 = vadd.f32 0.5, %v1654_v58 }
 0xd2c   :  { %v1662_v56 = vpack.c.bf16 %v1661_v50, %v1660_v55 }
 0xd2e   :  { %2081 = vmatmul.mubr.bf16.vlgmr.msra.gmra.mrb[28].mxu1 %v1662_v56 }
 0xe01   :  { %v1697_v47 = vpop.f32.mrb[28].mxu1 }
 0xe02   :  { %v1698_v48 = vadd.f32 %v1697_v47, %v1588_v18  ;;  %v2082_v7 = vpop.f32.mrb[29].mxu1 }
 0xe03   :  { %v1700_v1 = vpop.f32.mrb[30].mxu1 }
 0xe04   :  { %2236 = vtanh.f32 %v1698_v48  ;;  %v1701_v9 = vadd.f32 %v1700_v1, %v1591_v8  ;;  %v2083_v10 = vpop.f32.mrb[31].mxu1 }
 0xe06   :  { %2238 = vtanh.f32 %v1701_v9 }
 0xe0e   :  { %v2237_v45 = vpop.eup %2236 }
 0xe0f   :  { %v1706_v28 = vsub.f32 %v2237_v45, %v3076_v30  ;;  %v1581_v30 = vadd.f32 %v3066_v24, %v1442_v35 }
 0xe10   :  { %v2239_v22 = vpop.eup %2238 }
 0xe11   :  { %v1708_v25 = vmul.f32 %v1706_v28, %v1656_v5  ;;  %v1707_v11 = vsub.f32 %v2239_v22, %v3080_v34 }
 0xe13   :  { %v1712_v23 = vcombine.high %v1708_v25, %v1708_v25  ;;  %v1716_v37 = vadd.f32 %v1708_v25, %v3066_v24  ;;  %v1709_v61 = vmul.f32 %v1707_v11, %v1658_v39 }
 0xe15   :  { %v1717_v34 = vadd.f32 %v1712_v23, %v3063_v19  ;;  %v1720_v62 = vadd.f32 %v1716_v37, %v1581_v30  ;;  %v1713_v29 = vcombine.high %v1709_v61, %v1709_v61  ;;  %v1718_v63 = vadd.f32 %v1709_v61, %v3069_v14 }
 0xe17   :  { %v1719_v52 = vadd.f32 %v1713_v29, %v3072_v4  ;;  %v1721_v53 = vadd.f32 %v1717_v34, %v1582_v59  ;;  %v1722_v24 = vadd.f32 %v1718_v63, %v1583_v51  ;;  %v1725_v54 = vsel %vm1724_vm1, %v1720_v62, 0.0 }
 0xe18   :  { %v1726_v55 = vrot.slane %v1725_v54, 4 }
 0xe19   :  { %v1723_v50 = vadd.f32 %v1719_v52, %v1584_v41  ;;  %v1732_v12 = vsel %vm1724_vm1, %v1721_v53, 0.0  ;;  %v1739_v56 = vsel %vm1724_vm1, %v1722_v24, 0.0 }
 0xe1a   :  { %v1727_v57 = vadd.f32 %v1726_v55, %v1725_v54  ;;  %v1733_v19 = vrot.slane %v1732_v12, 4  ;;  %v1740_v2 = vrot.slane %v1739_v56, 4 }
 0xe1b   :  { %v1746_v31 = vsel %vm1724_vm1, %v1723_v50, 0.0 }
 0xe1c   :  { %v1728_v14 = vrot.slane %v1727_v57, 2  ;;  %v1734_v43 = vadd.f32 %v1733_v19, %v1732_v12  ;;  %v1741_v0 = vadd.f32 %v1740_v2, %v1739_v56  ;;  %v1747_v40 = vrot.slane %v1746_v31, 4 }
 0xe1e   :  { %v1729_v4 = vadd.f32 %v1728_v14, %v1727_v57  ;;  %v1735_v18 = vrot.slane %v1734_v43, 2  ;;  %v1742_v47 = vrot.slane %v1741_v0, 2  ;;  %v1748_v48 = vadd.f32 %v1747_v40, %v1746_v31 }
 0xe20   :  { %v1730_v7 = vrot.slane %v1729_v4, 1  ;;  %v1736_v8 = vadd.f32 %v1735_v18, %v1734_v43  ;;  %v1743_v1 = vadd.f32 %v1742_v47, %v1741_v0  ;;  %v1749_v9 = vrot.slane %v1748_v48, 2 }
 0xe22   :  { %v1737_v10 = vrot.slane %v1736_v8, 1  ;;  %v1744_v13 = vrot.slane %v1743_v1, 1  ;;  %v1750_v15 = vadd.f32 %v1749_v9, %v1748_v48  ;;  %v1731_v16 = vadd.f32 %v1730_v7, %v1729_v4 }
 0xe24   :  { %v1738_v44 = vadd.f32 %v1737_v10, %v1736_v8  ;;  %v1745_v27 = vadd.f32 %v1744_v13, %v1743_v1  ;;  %v1751_v32 = vrot.slane %v1750_v15, 1 }
 0xe26   :  { %v1752_v17 = vadd.f32 %v1751_v32, %v1750_v15  ;;  %v1758_v58 = vsel %vm1757_vm2, %v1738_v44, %v1731_v16 }
 0xe27   :  { %v1760_v45 = vsel %vm1759_vm3, %v1745_v27, %v1758_v58 }
 0xe28   :  { %v1762_v49 = vsel %vm1761_vm4, %v1752_v17, %v1760_v45 }
 0xe29   :  { %v1764_v33 = vadd.f32 %v2542_v38, %v1762_v49 }
 0xe2b   :  { %v1765_v46 = vmul.f32 0.03448276, %v1764_v33 }
 0xe2d   :  { %1766 = vst [vmem:[#allocation3] sm:$0xf] %v1765_v46 }
 0xe2e   :  { %2275 = shalt.err (!%p2272_p4)
}
 0xe2f   :  { %s2276_s15 = scalar_lea.hbm %s3137_s4, 64 }
 0xe30   :  { %p2277_p5 = scmp.ne.s32.totalorder %s3137_s4, %s2276_s15  ;;  %p2280_p6 = scmp.lt.u32.totalorder %s2276_s15, %s3137_s4 }
 0xe32   :  { %p2282_p7 = pnand %p2280_p6, %p2277_p5 }
 0xe34   :  { %2285 = shalt.err (!%p2282_p7)
}
 0xe35   :  { %1776 = dma.vmem_to_hbm [thread:$0]  %s1774_s11, 64, %s3137_s4, [#allocation4]  }
 0xe36   :  { %2286 = dma.done.wait [#allocation4], 64  }
 0xe37   :  { %2287 = vsyncadd [#allocation4], 4294967232 }
 0xe38   :  { %1780 = vsyncpa [#allocation4], 1 }

</bundles_post_ra>
